<compile_context>
chip_gen: v7x
topology: tpu7x:2x2x1
jax: 0.10.0
libtpu: 0.0.40
codegen_flags: <defaults>
</compile_context>

<pallas_src>
import functools
import math

import jax
import jax.numpy as jnp
from jax.experimental import pallas as pl
from jax.experimental.pallas import tpu as pltpu


def _vmem_budget_bytes(default=32 * 1024 * 1024, frac=0.75):
    """Scoped-VMEM budget derived from the physical VMEM of this chip, with headroom."""
    try:
        cap = int(pltpu.get_tpu_info().vmem_capacity_bytes)
        return int(cap * frac)
    except Exception:
        return default


# ---------------------------------------------------------------------------
# Fused kernel: one batch element per grid step.
#   x[N, C] -> qkv = x @ W_qkv + b_qkv -> per-head softmax attention
#            -> concat heads (lane-dense [N, C]) -> out = o @ W_proj + b_proj
# ---------------------------------------------------------------------------
def _fused_self_attention_kernel(x_ref, w_qkv_ref, b_qkv_ref, w_proj_ref, b_proj_ref,
                                 out_ref, *, num_heads, scale):
    C = x_ref.shape[-1]
    H = num_heads
    D = C // H
    in_dtype = x_ref.dtype

    x = x_ref[...]                                                      # [N, C]

    # QKV projection: MXU matmul with f32 accumulation, bias added in f32.
    qkv = jnp.dot(x, w_qkv_ref[...], preferred_element_type=jnp.float32)
    qkv = qkv + b_qkv_ref[...].astype(jnp.float32)                      # [N, 3C] f32
    # Keep MXU operands in the input dtype (bf16 stays bf16 -> native MXU input path).
    qkv = qkv.astype(in_dtype)

    # qkv feature layout is (qkv_sel, head, D): q = [:, :C], k = [:, C:2C], v = [:, 2C:].
    # Fold the softmax scale into q here: O(N*C) multiplies instead of O(N*N) on scores.
    q = qkv[:, :C] * scale
    k = qkv[:, C:2 * C]
    v = qkv[:, 2 * C:]

    heads_out = []
    # Static per-head loop; each head is a D-wide column slice.  Head outputs are
    # re-concatenated so the final store is one lane-dense [N, C] write.
    for h in range(H):
        sl = slice(h * D, (h + 1) * D)
        q_h = q[:, sl]                                                  # [N, D]
        k_h = k[:, sl]                                                  # [N, D]
        v_h = v[:, sl]                                                  # [N, D]

        # scores = q_h @ k_h^T (contract on D, no explicit transpose), f32 accumulation.
        s = jax.lax.dot_general(q_h, k_h, (((1,), (1,)), ((), ())),
                                preferred_element_type=jnp.float32)     # [N, N] f32

        # Numerically-stable softmax over keys; normalization deferred to the output.
        m = jnp.max(s, axis=-1, keepdims=True)
        p = jnp.exp(s - m)
        l = jnp.sum(p, axis=-1, keepdims=True)                          # [N, 1] f32
        # attn_drop has p = 0.0 -> identity.

        o_h = jnp.dot(p.astype(in_dtype), v_h,
                      preferred_element_type=jnp.float32)               # [N, D] f32
        # Normalize the [N, D] output instead of dividing the [N, N] probabilities.
        # (Use approx=True in production to hit the EUP slot; exact keeps the f32 demo
        #  tight against the reference.)
        o_h = o_h * pl.reciprocal(l, approx=False)
        heads_out.append(o_h)

    o = jnp.concatenate(heads_out, axis=-1).astype(in_dtype)            # [N, C]

    # Output projection (proj_drop p = 0.0 -> identity).
    y = jnp.dot(o, w_proj_ref[...], preferred_element_type=jnp.float32)
    y = y + b_proj_ref[...].astype(jnp.float32)
    out_ref[...] = y.astype(out_ref.dtype)


def self_attention_pallas(x, params, num_heads):
    """x: [B, N, C]; params: w_qkv[C,3C], b_qkv[3C], w_proj[C,C], b_proj[C]."""
    B, N, C = x.shape
    D = C // num_heads
    scale = D ** -0.5

    w_qkv, b_qkv = params["w_qkv"], params["b_qkv"]
    w_proj, b_proj = params["w_proj"], params["b_proj"]

    kernel = functools.partial(_fused_self_attention_kernel,
                               num_heads=num_heads, scale=float(scale))

    itemsize = jnp.dtype(x.dtype).itemsize
    wsize = jnp.dtype(w_qkv.dtype).itemsize
    est = (
        2 * N * C * itemsize                 # double-buffered x blocks
        + 2 * N * C * itemsize               # double-buffered output blocks
        + (C * 3 * C + 3 * C) * wsize        # resident qkv weights + bias (1 buffer)
        + (C * C + C) * wsize                # resident proj weights + bias (1 buffer)
        + N * 3 * C * 4                      # f32 qkv intermediate
        + 2 * N * N * 4                      # live per-head f32 scores/probs
        + 3 * N * C * 4                      # f32 head outputs + proj accumulator
    )
    vmem_limit = int(min(_vmem_budget_bytes(), max(16 * 1024 * 1024, 2 * est)))

    resident = dict(pipeline_mode=pl.Buffered(1))   # weights: fetch once, single buffer

    return pl.pallas_call(
        kernel,
        out_shape=jax.ShapeDtypeStruct((B, N, C), x.dtype),
        grid_spec=pltpu.PrefetchScalarGridSpec(
            num_scalar_prefetch=0,
            grid=(B,),
            in_specs=[
                pl.BlockSpec((pl.Squeezed(), N, C), lambda b: (b, 0, 0)),      # x
                pl.BlockSpec((C, 3 * C), lambda b: (0, 0), **resident),        # w_qkv
                pl.BlockSpec((1, 3 * C), lambda b: (0, 0), **resident),        # b_qkv
                pl.BlockSpec((C, C), lambda b: (0, 0), **resident),            # w_proj
                pl.BlockSpec((1, C), lambda b: (0, 0), **resident),            # b_proj
            ],
            out_specs=pl.BlockSpec((pl.Squeezed(), N, C), lambda b: (b, 0, 0)),
        ),
        compiler_params=pltpu.CompilerParams(
            dimension_semantics=("parallel",),
            vmem_limit_bytes=vmem_limit,
        ),
    )(x, w_qkv, b_qkv.reshape(1, 3 * C), w_proj, b_proj.reshape(1, C))


# ---------------------------------------------------------------------------
# Pure-JAX reference (mirrors the PyTorch forward) + init helpers.
# ---------------------------------------------------------------------------
def self_attention_reference(x, params, num_heads):
    B, N, C = x.shape
    H = num_heads
    D = C // H
    scale = D ** -0.5
    hp = jax.lax.Precision.HIGHEST
    qkv = jnp.dot(x.reshape(B * N, C), params["w_qkv"], precision=hp) + params["b_qkv"]
    qkv = qkv.reshape(B, N, 3, H, D).transpose(2, 0, 3, 1, 4)
    q, k, v = qkv[0], qkv[1], qkv[2]
    attn = jnp.einsum("bhnd,bhmd->bhnm", q, k, precision=hp) * scale
    attn = jax.nn.softmax(attn, axis=-1)
    o = jnp.einsum("bhnm,bhmd->bhnd", attn, v, precision=hp)
    o = o.transpose(0, 2, 1, 3).reshape(B * N, C)
    out = jnp.dot(o, params["w_proj"], precision=hp) + params["b_proj"]
    return out.reshape(B, N, C)


def init_linear_params(key, fan_in, fan_out, dtype=jnp.float32):
    """Mimics torch.nn.Linear defaults (kaiming-uniform a=sqrt(5)); weight stored [in, out]."""
    k_w, k_b = jax.random.split(key)
    bound_w = math.sqrt(3.0 / fan_in)
    w = jax.random.uniform(k_w, (fan_in, fan_out), dtype, -bound_w, bound_w)
    bound_b = 1.0 / math.sqrt(fan_in)
    b = jax.random.uniform(k_b, (fan_out,), dtype, -bound_b, bound_b)
    return w, b


if __name__ == "__main__":
    # Small shapes consistent with the module: B=2, seq N=16, dim C=64, heads=8 -> D=8.
    batch, seq, dim, num_heads = 2, 16, 64, 8

    key = jax.random.PRNGKey(0)
    kx, k1, k2 = jax.random.split(key, 3)

    x = jax.random.normal(kx, (batch, seq, dim), jnp.float32)
    w_qkv, b_qkv = init_linear_params(k1, dim, 3 * dim)
    w_proj, b_proj = init_linear_params(k2, dim, dim)
    params = dict(w_qkv=w_qkv, b_qkv=b_qkv, w_proj=w_proj, b_proj=b_proj)

    y = self_attention_pallas(x, params, num_heads)
    jax.block_until_ready(y)

    y_ref = self_attention_reference(x, params, num_heads)
    assert y.shape == (batch, seq, dim)
    assert jnp.allclose(y, y_ref, atol=1e-3, rtol=1e-3), "mismatch vs reference"

    print("KERNEL_OK")
</pallas_src>

<mosaic_0001>
module attributes {stable_mosaic.version = 11 : i64} {
  func.func @_fused_self_attention_kernel(%arg0: i32, %arg1: memref<1x16x64xf32, #tpu.memory_space<vmem>>, %arg2: memref<64x192xf32, #tpu.memory_space<vmem>>, %arg3: memref<1x192xf32, #tpu.memory_space<vmem>>, %arg4: memref<64x64xf32, #tpu.memory_space<vmem>>, %arg5: memref<1x64xf32, #tpu.memory_space<vmem>>, %arg6: memref<1x16x64xf32, #tpu.memory_space<vmem>>) attributes {dimension_semantics = [#tpu.dimension_semantics<parallel>], iteration_bounds = array<i64: 2>, scalar_prefetch = 0 : i64, scratch_operands = 0 : i64, tpu.core_type = #tpu.core_type<tc>, window_params = [{transform_indices = @transform_0, window_bounds = array<i64: 1, 16, 64>}, {pipeline_mode = #tpu.pipeline_mode<synchronous>, transform_indices = @transform_1, window_bounds = array<i64: 64, 192>}, {pipeline_mode = #tpu.pipeline_mode<synchronous>, transform_indices = @transform_2, window_bounds = array<i64: 1, 192>}, {pipeline_mode = #tpu.pipeline_mode<synchronous>, transform_indices = @transform_3, window_bounds = array<i64: 64, 64>}, {pipeline_mode = #tpu.pipeline_mode<synchronous>, transform_indices = @transform_4, window_bounds = array<i64: 1, 64>}, {transform_indices = @transform_5, window_bounds = array<i64: 1, 16, 64>}]} {
    %c0 = arith.constant 0 : index
    %c0_0 = arith.constant 0 : index
    %c0_1 = arith.constant 0 : index
    %0 = vector.load %arg1[%c0, %c0_0, %c0_1] : memref<1x16x64xf32, #tpu.memory_space<vmem>>, vector<1x16x64xf32>
    %1 = vector.shape_cast %0 : vector<1x16x64xf32> to vector<16x64xf32>
    %c0_2 = arith.constant 0 : index
    %c0_3 = arith.constant 0 : index
    %2 = vector.load %arg2[%c0_2, %c0_3] : memref<64x192xf32, #tpu.memory_space<vmem>>, vector<64x192xf32>
    %cst = arith.constant dense<0.000000e+00> : vector<16x192xf32>
    %3 = tpu.matmul %1, %2, %cst {dimension_numbers = #tpu.dot_dimension_numbers<[1], [0], [0], [1], [0, 0, 1, 1], [], []>} : vector<16x64xf32>, vector<64x192xf32>, vector<16x192xf32> -> vector<16x192xf32>
    %c0_4 = arith.constant 0 : index
    %c0_5 = arith.constant 0 : index
    %4 = vector.load %arg3[%c0_4, %c0_5] : memref<1x192xf32, #tpu.memory_space<vmem>>, vector<1x192xf32>
    %5 = vector.broadcast %4 : vector<1x192xf32> to vector<16x192xf32>
    %6 = arith.addf %3, %5 : vector<16x192xf32>
    %7 = vector.extract_strided_slice %6 {offsets = [0, 0], sizes = [16, 64], strides = [1, 1]} : vector<16x192xf32> to vector<16x64xf32>
    %cst_6 = arith.constant 0.353553385 : f32
    %8 = vector.broadcast %cst_6 : f32 to vector<16x64xf32>
    %9 = arith.mulf %7, %8 : vector<16x64xf32>
    %10 = vector.extract_strided_slice %6 {offsets = [0, 64], sizes = [16, 64], strides = [1, 1]} : vector<16x192xf32> to vector<16x64xf32>
    %11 = vector.extract_strided_slice %6 {offsets = [0, 128], sizes = [16, 64], strides = [1, 1]} : vector<16x192xf32> to vector<16x64xf32>
    %12 = vector.extract_strided_slice %9 {offsets = [0, 0], sizes = [16, 8], strides = [1, 1]} : vector<16x64xf32> to vector<16x8xf32>
    %13 = vector.extract_strided_slice %10 {offsets = [0, 0], sizes = [16, 8], strides = [1, 1]} : vector<16x64xf32> to vector<16x8xf32>
    %14 = vector.extract_strided_slice %11 {offsets = [0, 0], sizes = [16, 8], strides = [1, 1]} : vector<16x64xf32> to vector<16x8xf32>
    %cst_7 = arith.constant dense<0.000000e+00> : vector<16x16xf32>
    %15 = tpu.matmul %12, %13, %cst_7 {dimension_numbers = #tpu.dot_dimension_numbers<[1], [1], [0], [0], [0, 0, 1, 0], [], []>} : vector<16x8xf32>, vector<16x8xf32>, vector<16x16xf32> -> vector<16x16xf32>
    %cst_8 = arith.constant dense<0xFF800000> : vector<16xf32>
    %16 = vector.multi_reduction <maximumf>, %15, %cst_8 [1] : vector<16x16xf32> to vector<16xf32>
    %17 = vector.shape_cast %16 : vector<16xf32> to vector<16x1xf32>
    %18 = vector.broadcast %17 : vector<16x1xf32> to vector<16x16xf32>
    %19 = arith.subf %15, %18 : vector<16x16xf32>
    %20 = math.exp %19 : vector<16x16xf32>
    %cst_9 = arith.constant dense<0.000000e+00> : vector<16xf32>
    %21 = vector.multi_reduction <add>, %20, %cst_9 [1] : vector<16x16xf32> to vector<16xf32>
    %22 = vector.shape_cast %21 : vector<16xf32> to vector<16x1xf32>
    %cst_10 = arith.constant dense<0.000000e+00> : vector<16x8xf32>
    %23 = tpu.matmul %20, %14, %cst_10 {dimension_numbers = #tpu.dot_dimension_numbers<[1], [0], [0], [1], [0, 0, 1, 1], [], []>} : vector<16x16xf32>, vector<16x8xf32>, vector<16x8xf32> -> vector<16x8xf32>
    %24 = tpu.reciprocal %22 : vector<16x1xf32> -> vector<16x1xf32>
    %25 = vector.broadcast %24 : vector<16x1xf32> to vector<16x8xf32>
    %26 = arith.mulf %23, %25 : vector<16x8xf32>
    %27 = vector.extract_strided_slice %9 {offsets = [0, 8], sizes = [16, 8], strides = [1, 1]} : vector<16x64xf32> to vector<16x8xf32>
    %28 = vector.extract_strided_slice %10 {offsets = [0, 8], sizes = [16, 8], strides = [1, 1]} : vector<16x64xf32> to vector<16x8xf32>
    %29 = vector.extract_strided_slice %11 {offsets = [0, 8], sizes = [16, 8], strides = [1, 1]} : vector<16x64xf32> to vector<16x8xf32>
    %cst_11 = arith.constant dense<0.000000e+00> : vector<16x16xf32>
    %30 = tpu.matmul %27, %28, %cst_11 {dimension_numbers = #tpu.dot_dimension_numbers<[1], [1], [0], [0], [0, 0, 1, 0], [], []>} : vector<16x8xf32>, vector<16x8xf32>, vector<16x16xf32> -> vector<16x16xf32>
    %cst_12 = arith.constant dense<0xFF800000> : vector<16xf32>
    %31 = vector.multi_reduction <maximumf>, %30, %cst_12 [1] : vector<16x16xf32> to vector<16xf32>
    %32 = vector.shape_cast %31 : vector<16xf32> to vector<16x1xf32>
    %33 = vector.broadcast %32 : vector<16x1xf32> to vector<16x16xf32>
    %34 = arith.subf %30, %33 : vector<16x16xf32>
    %35 = math.exp %34 : vector<16x16xf32>
    %cst_13 = arith.constant dense<0.000000e+00> : vector<16xf32>
    %36 = vector.multi_reduction <add>, %35, %cst_13 [1] : vector<16x16xf32> to vector<16xf32>
    %37 = vector.shape_cast %36 : vector<16xf32> to vector<16x1xf32>
    %cst_14 = arith.constant dense<0.000000e+00> : vector<16x8xf32>
    %38 = tpu.matmul %35, %29, %cst_14 {dimension_numbers = #tpu.dot_dimension_numbers<[1], [0], [0], [1], [0, 0, 1, 1], [], []>} : vector<16x16xf32>, vector<16x8xf32>, vector<16x8xf32> -> vector<16x8xf32>
    %39 = tpu.reciprocal %37 : vector<16x1xf32> -> vector<16x1xf32>
    %40 = vector.broadcast %39 : vector<16x1xf32> to vector<16x8xf32>
    %41 = arith.mulf %38, %40 : vector<16x8xf32>
    %42 = vector.extract_strided_slice %9 {offsets = [0, 16], sizes = [16, 8], strides = [1, 1]} : vector<16x64xf32> to vector<16x8xf32>
    %43 = vector.extract_strided_slice %10 {offsets = [0, 16], sizes = [16, 8], strides = [1, 1]} : vector<16x64xf32> to vector<16x8xf32>
    %44 = vector.extract_strided_slice %11 {offsets = [0, 16], sizes = [16, 8], strides = [1, 1]} : vector<16x64xf32> to vector<16x8xf32>
    %cst_15 = arith.constant dense<0.000000e+00> : vector<16x16xf32>
    %45 = tpu.matmul %42, %43, %cst_15 {dimension_numbers = #tpu.dot_dimension_numbers<[1], [1], [0], [0], [0, 0, 1, 0], [], []>} : vector<16x8xf32>, vector<16x8xf32>, vector<16x16xf32> -> vector<16x16xf32>
    %cst_16 = arith.constant dense<0xFF800000> : vector<16xf32>
    %46 = vector.multi_reduction <maximumf>, %45, %cst_16 [1] : vector<16x16xf32> to vector<16xf32>
    %47 = vector.shape_cast %46 : vector<16xf32> to vector<16x1xf32>
    %48 = vector.broadcast %47 : vector<16x1xf32> to vector<16x16xf32>
    %49 = arith.subf %45, %48 : vector<16x16xf32>
    %50 = math.exp %49 : vector<16x16xf32>
    %cst_17 = arith.constant dense<0.000000e+00> : vector<16xf32>
    %51 = vector.multi_reduction <add>, %50, %cst_17 [1] : vector<16x16xf32> to vector<16xf32>
    %52 = vector.shape_cast %51 : vector<16xf32> to vector<16x1xf32>
    %cst_18 = arith.constant dense<0.000000e+00> : vector<16x8xf32>
    %53 = tpu.matmul %50, %44, %cst_18 {dimension_numbers = #tpu.dot_dimension_numbers<[1], [0], [0], [1], [0, 0, 1, 1], [], []>} : vector<16x16xf32>, vector<16x8xf32>, vector<16x8xf32> -> vector<16x8xf32>
    %54 = tpu.reciprocal %52 : vector<16x1xf32> -> vector<16x1xf32>
    %55 = vector.broadcast %54 : vector<16x1xf32> to vector<16x8xf32>
    %56 = arith.mulf %53, %55 : vector<16x8xf32>
    %57 = vector.extract_strided_slice %9 {offsets = [0, 24], sizes = [16, 8], strides = [1, 1]} : vector<16x64xf32> to vector<16x8xf32>
    %58 = vector.extract_strided_slice %10 {offsets = [0, 24], sizes = [16, 8], strides = [1, 1]} : vector<16x64xf32> to vector<16x8xf32>
    %59 = vector.extract_strided_slice %11 {offsets = [0, 24], sizes = [16, 8], strides = [1, 1]} : vector<16x64xf32> to vector<16x8xf32>
    %cst_19 = arith.constant dense<0.000000e+00> : vector<16x16xf32>
    %60 = tpu.matmul %57, %58, %cst_19 {dimension_numbers = #tpu.dot_dimension_numbers<[1], [1], [0], [0], [0, 0, 1, 0], [], []>} : vector<16x8xf32>, vector<16x8xf32>, vector<16x16xf32> -> vector<16x16xf32>
    %cst_20 = arith.constant dense<0xFF800000> : vector<16xf32>
    %61 = vector.multi_reduction <maximumf>, %60, %cst_20 [1] : vector<16x16xf32> to vector<16xf32>
    %62 = vector.shape_cast %61 : vector<16xf32> to vector<16x1xf32>
    %63 = vector.broadcast %62 : vector<16x1xf32> to vector<16x16xf32>
    %64 = arith.subf %60, %63 : vector<16x16xf32>
    %65 = math.exp %64 : vector<16x16xf32>
    %cst_21 = arith.constant dense<0.000000e+00> : vector<16xf32>
    %66 = vector.multi_reduction <add>, %65, %cst_21 [1] : vector<16x16xf32> to vector<16xf32>
    %67 = vector.shape_cast %66 : vector<16xf32> to vector<16x1xf32>
    %cst_22 = arith.constant dense<0.000000e+00> : vector<16x8xf32>
    %68 = tpu.matmul %65, %59, %cst_22 {dimension_numbers = #tpu.dot_dimension_numbers<[1], [0], [0], [1], [0, 0, 1, 1], [], []>} : vector<16x16xf32>, vector<16x8xf32>, vector<16x8xf32> -> vector<16x8xf32>
    %69 = tpu.reciprocal %67 : vector<16x1xf32> -> vector<16x1xf32>
    %70 = vector.broadcast %69 : vector<16x1xf32> to vector<16x8xf32>
    %71 = arith.mulf %68, %70 : vector<16x8xf32>
    %72 = vector.extract_strided_slice %9 {offsets = [0, 32], sizes = [16, 8], strides = [1, 1]} : vector<16x64xf32> to vector<16x8xf32>
    %73 = vector.extract_strided_slice %10 {offsets = [0, 32], sizes = [16, 8], strides = [1, 1]} : vector<16x64xf32> to vector<16x8xf32>
    %74 = vector.extract_strided_slice %11 {offsets = [0, 32], sizes = [16, 8], strides = [1, 1]} : vector<16x64xf32> to vector<16x8xf32>
    %cst_23 = arith.constant dense<0.000000e+00> : vector<16x16xf32>
    %75 = tpu.matmul %72, %73, %cst_23 {dimension_numbers = #tpu.dot_dimension_numbers<[1], [1], [0], [0], [0, 0, 1, 0], [], []>} : vector<16x8xf32>, vector<16x8xf32>, vector<16x16xf32> -> vector<16x16xf32>
    %cst_24 = arith.constant dense<0xFF800000> : vector<16xf32>
    %76 = vector.multi_reduction <maximumf>, %75, %cst_24 [1] : vector<16x16xf32> to vector<16xf32>
    %77 = vector.shape_cast %76 : vector<16xf32> to vector<16x1xf32>
    %78 = vector.broadcast %77 : vector<16x1xf32> to vector<16x16xf32>
    %79 = arith.subf %75, %78 : vector<16x16xf32>
    %80 = math.exp %79 : vector<16x16xf32>
    %cst_25 = arith.constant dense<0.000000e+00> : vector<16xf32>
    %81 = vector.multi_reduction <add>, %80, %cst_25 [1] : vector<16x16xf32> to vector<16xf32>
    %82 = vector.shape_cast %81 : vector<16xf32> to vector<16x1xf32>
    %cst_26 = arith.constant dense<0.000000e+00> : vector<16x8xf32>
    %83 = tpu.matmul %80, %74, %cst_26 {dimension_numbers = #tpu.dot_dimension_numbers<[1], [0], [0], [1], [0, 0, 1, 1], [], []>} : vector<16x16xf32>, vector<16x8xf32>, vector<16x8xf32> -> vector<16x8xf32>
    %84 = tpu.reciprocal %82 : vector<16x1xf32> -> vector<16x1xf32>
    %85 = vector.broadcast %84 : vector<16x1xf32> to vector<16x8xf32>
    %86 = arith.mulf %83, %85 : vector<16x8xf32>
    %87 = vector.extract_strided_slice %9 {offsets = [0, 40], sizes = [16, 8], strides = [1, 1]} : vector<16x64xf32> to vector<16x8xf32>
    %88 = vector.extract_strided_slice %10 {offsets = [0, 40], sizes = [16, 8], strides = [1, 1]} : vector<16x64xf32> to vector<16x8xf32>
    %89 = vector.extract_strided_slice %11 {offsets = [0, 40], sizes = [16, 8], strides = [1, 1]} : vector<16x64xf32> to vector<16x8xf32>
    %cst_27 = arith.constant dense<0.000000e+00> : vector<16x16xf32>
    %90 = tpu.matmul %87, %88, %cst_27 {dimension_numbers = #tpu.dot_dimension_numbers<[1], [1], [0], [0], [0, 0, 1, 0], [], []>} : vector<16x8xf32>, vector<16x8xf32>, vector<16x16xf32> -> vector<16x16xf32>
    %cst_28 = arith.constant dense<0xFF800000> : vector<16xf32>
    %91 = vector.multi_reduction <maximumf>, %90, %cst_28 [1] : vector<16x16xf32> to vector<16xf32>
    %92 = vector.shape_cast %91 : vector<16xf32> to vector<16x1xf32>
    %93 = vector.broadcast %92 : vector<16x1xf32> to vector<16x16xf32>
    %94 = arith.subf %90, %93 : vector<16x16xf32>
    %95 = math.exp %94 : vector<16x16xf32>
    %cst_29 = arith.constant dense<0.000000e+00> : vector<16xf32>
    %96 = vector.multi_reduction <add>, %95, %cst_29 [1] : vector<16x16xf32> to vector<16xf32>
    %97 = vector.shape_cast %96 : vector<16xf32> to vector<16x1xf32>
    %cst_30 = arith.constant dense<0.000000e+00> : vector<16x8xf32>
    %98 = tpu.matmul %95, %89, %cst_30 {dimension_numbers = #tpu.dot_dimension_numbers<[1], [0], [0], [1], [0, 0, 1, 1], [], []>} : vector<16x16xf32>, vector<16x8xf32>, vector<16x8xf32> -> vector<16x8xf32>
    %99 = tpu.reciprocal %97 : vector<16x1xf32> -> vector<16x1xf32>
    %100 = vector.broadcast %99 : vector<16x1xf32> to vector<16x8xf32>
    %101 = arith.mulf %98, %100 : vector<16x8xf32>
    %102 = vector.extract_strided_slice %9 {offsets = [0, 48], sizes = [16, 8], strides = [1, 1]} : vector<16x64xf32> to vector<16x8xf32>
    %103 = vector.extract_strided_slice %10 {offsets = [0, 48], sizes = [16, 8], strides = [1, 1]} : vector<16x64xf32> to vector<16x8xf32>
    %104 = vector.extract_strided_slice %11 {offsets = [0, 48], sizes = [16, 8], strides = [1, 1]} : vector<16x64xf32> to vector<16x8xf32>
    %cst_31 = arith.constant dense<0.000000e+00> : vector<16x16xf32>
    %105 = tpu.matmul %102, %103, %cst_31 {dimension_numbers = #tpu.dot_dimension_numbers<[1], [1], [0], [0], [0, 0, 1, 0], [], []>} : vector<16x8xf32>, vector<16x8xf32>, vector<16x16xf32> -> vector<16x16xf32>
    %cst_32 = arith.constant dense<0xFF800000> : vector<16xf32>
    %106 = vector.multi_reduction <maximumf>, %105, %cst_32 [1] : vector<16x16xf32> to vector<16xf32>
    %107 = vector.shape_cast %106 : vector<16xf32> to vector<16x1xf32>
    %108 = vector.broadcast %107 : vector<16x1xf32> to vector<16x16xf32>
    %109 = arith.subf %105, %108 : vector<16x16xf32>
    %110 = math.exp %109 : vector<16x16xf32>
    %cst_33 = arith.constant dense<0.000000e+00> : vector<16xf32>
    %111 = vector.multi_reduction <add>, %110, %cst_33 [1] : vector<16x16xf32> to vector<16xf32>
    %112 = vector.shape_cast %111 : vector<16xf32> to vector<16x1xf32>
    %cst_34 = arith.constant dense<0.000000e+00> : vector<16x8xf32>
    %113 = tpu.matmul %110, %104, %cst_34 {dimension_numbers = #tpu.dot_dimension_numbers<[1], [0], [0], [1], [0, 0, 1, 1], [], []>} : vector<16x16xf32>, vector<16x8xf32>, vector<16x8xf32> -> vector<16x8xf32>
    %114 = tpu.reciprocal %112 : vector<16x1xf32> -> vector<16x1xf32>
    %115 = vector.broadcast %114 : vector<16x1xf32> to vector<16x8xf32>
    %116 = arith.mulf %113, %115 : vector<16x8xf32>
    %117 = vector.extract_strided_slice %9 {offsets = [0, 56], sizes = [16, 8], strides = [1, 1]} : vector<16x64xf32> to vector<16x8xf32>
    %118 = vector.extract_strided_slice %10 {offsets = [0, 56], sizes = [16, 8], strides = [1, 1]} : vector<16x64xf32> to vector<16x8xf32>
    %119 = vector.extract_strided_slice %11 {offsets = [0, 56], sizes = [16, 8], strides = [1, 1]} : vector<16x64xf32> to vector<16x8xf32>
    %cst_35 = arith.constant dense<0.000000e+00> : vector<16x16xf32>
    %120 = tpu.matmul %117, %118, %cst_35 {dimension_numbers = #tpu.dot_dimension_numbers<[1], [1], [0], [0], [0, 0, 1, 0], [], []>} : vector<16x8xf32>, vector<16x8xf32>, vector<16x16xf32> -> vector<16x16xf32>
    %cst_36 = arith.constant dense<0xFF800000> : vector<16xf32>
    %121 = vector.multi_reduction <maximumf>, %120, %cst_36 [1] : vector<16x16xf32> to vector<16xf32>
    %122 = vector.shape_cast %121 : vector<16xf32> to vector<16x1xf32>
    %123 = vector.broadcast %122 : vector<16x1xf32> to vector<16x16xf32>
    %124 = arith.subf %120, %123 : vector<16x16xf32>
    %125 = math.exp %124 : vector<16x16xf32>
    %cst_37 = arith.constant dense<0.000000e+00> : vector<16xf32>
    %126 = vector.multi_reduction <add>, %125, %cst_37 [1] : vector<16x16xf32> to vector<16xf32>
    %127 = vector.shape_cast %126 : vector<16xf32> to vector<16x1xf32>
    %cst_38 = arith.constant dense<0.000000e+00> : vector<16x8xf32>
    %128 = tpu.matmul %125, %119, %cst_38 {dimension_numbers = #tpu.dot_dimension_numbers<[1], [0], [0], [1], [0, 0, 1, 1], [], []>} : vector<16x16xf32>, vector<16x8xf32>, vector<16x8xf32> -> vector<16x8xf32>
    %129 = tpu.reciprocal %127 : vector<16x1xf32> -> vector<16x1xf32>
    %130 = vector.broadcast %129 : vector<16x1xf32> to vector<16x8xf32>
    %131 = arith.mulf %128, %130 : vector<16x8xf32>
    %132 = tpu.concatenate %26, %41, %56, %71, %86, %101, %116, %131 in 1 : vector<16x8xf32>, vector<16x8xf32>, vector<16x8xf32>, vector<16x8xf32>, vector<16x8xf32>, vector<16x8xf32>, vector<16x8xf32>, vector<16x8xf32> -> vector<16x64xf32>
    %c0_39 = arith.constant 0 : index
    %c0_40 = arith.constant 0 : index
    %133 = vector.load %arg4[%c0_39, %c0_40] : memref<64x64xf32, #tpu.memory_space<vmem>>, vector<64x64xf32>
    %cst_41 = arith.constant dense<0.000000e+00> : vector<16x64xf32>
    %134 = tpu.matmul %132, %133, %cst_41 {dimension_numbers = #tpu.dot_dimension_numbers<[1], [0], [0], [1], [0, 0, 1, 1], [], []>} : vector<16x64xf32>, vector<64x64xf32>, vector<16x64xf32> -> vector<16x64xf32>
    %c0_42 = arith.constant 0 : index
    %c0_43 = arith.constant 0 : index
    %135 = vector.load %arg5[%c0_42, %c0_43] : memref<1x64xf32, #tpu.memory_space<vmem>>, vector<1x64xf32>
    %136 = vector.broadcast %135 : vector<1x64xf32> to vector<16x64xf32>
    %137 = arith.addf %134, %136 : vector<16x64xf32>
    %c0_44 = arith.constant 0 : index
    %c0_45 = arith.constant 0 : index
    %c0_46 = arith.constant 0 : index
    %138 = vector.load %arg6[%c0_44, %c0_45, %c0_46] : memref<1x16x64xf32, #tpu.memory_space<vmem>>, vector<1x16x64xf32>
    %139 = vector.shape_cast %138 : vector<1x16x64xf32> to vector<16x64xf32>
    %140 = vector.shape_cast %137 : vector<16x64xf32> to vector<1x16x64xf32>
    tpu.vector_store %arg6[%c0_44, %c0_45, %c0_46], %140 {strides = array<i32>} : memref<1x16x64xf32, #tpu.memory_space<vmem>>, vector<1x16x64xf32>,
    return
  }
  func.func @transform_0(%arg0: i32) -> (i32, i32, i32) {
    %c0_i32 = arith.constant 0 : i32
    %c0_i32_0 = arith.constant 0 : i32
    %c0_i32_1 = arith.constant 0 : i32
    return %arg0, %c0_i32, %c0_i32_0 : i32, i32, i32
  }
  func.func @transform_1(%arg0: i32) -> (i32, i32) {
    %c0_i32 = arith.constant 0 : i32
    %c0_i32_0 = arith.constant 0 : i32
    %c0_i32_1 = arith.constant 0 : i32
    return %c0_i32, %c0_i32_0 : i32, i32
  }
  func.func @transform_2(%arg0: i32) -> (i32, i32) {
    %c0_i32 = arith.constant 0 : i32
    %c0_i32_0 = arith.constant 0 : i32
    %c0_i32_1 = arith.constant 0 : i32
    return %c0_i32, %c0_i32_0 : i32, i32
  }
  func.func @transform_3(%arg0: i32) -> (i32, i32) {
    %c0_i32 = arith.constant 0 : i32
    %c0_i32_0 = arith.constant 0 : i32
    %c0_i32_1 = arith.constant 0 : i32
    return %c0_i32, %c0_i32_0 : i32, i32
  }
  func.func @transform_4(%arg0: i32) -> (i32, i32) {
    %c0_i32 = arith.constant 0 : i32
    %c0_i32_0 = arith.constant 0 : i32
    %c0_i32_1 = arith.constant 0 : i32
    return %c0_i32, %c0_i32_0 : i32, i32
  }
  func.func @transform_5(%arg0: i32) -> (i32, i32, i32) {
    %c0_i32 = arith.constant 0 : i32
    %c0_i32_0 = arith.constant 0 : i32
    %c0_i32_1 = arith.constant 0 : i32
    return %arg0, %c0_i32, %c0_i32_0 : i32, i32, i32
  }
}

</mosaic_0001>

<bundles_post_ra>
// kernel: tpu_custom_call.1
= control target key start
LH: loop header
LB: loop body
LE: loop exit
PB: predicated region body
PF: predicated region fallthrough
CT: control target
= control target key end

     0   :  { %10 = vsyncpa [#allocation3], 0  ;;  %s3630_s0 = inlined_call_operand.hbm [shape: f32[2,16,64], index: 0, kind: input, shape index: {}]   ;;  %s3631_s1 = inlined_call_operand.hbm [shape: f32[64,192], index: 1, kind: input, shape index: {}]   ;;  %s3632_s2 = inlined_call_operand.vmem [shape: f32[1,192], index: 2, kind: input, shape index: {}]   ;;  %s3633_s3 = inlined_call_operand.hbm [shape: f32[64,64], index: 3, kind: input, shape index: {}]   ;;  %s3634_s4 = inlined_call_operand.vmem [shape: f32[1,64], index: 4, kind: input, shape index: {}]   ;;  %s3635_s5 = inlined_call_operand.hbm [shape: f32[2,16,64], index: 5, kind: output, shape index: {}]  }
   0x1   :  { %12 = vsyncpa [#allocation3 + $0x1], 0 }
   0x2   :  { %13 = vsyncpa [#allocation6], 0 }
   0x3   :  { %14 = vsyncpa [#allocation4], 0 }
   0x4   :  { %16 = vsyncpa [#allocation4 + $0x1], 0  ;;  %s3095_s18 = smov 0   ;;  %s3097_s19 = smov 0  }
   0x5   :  { %s3099_s20 = smov 0   ;;  %s3101_s21 = smov 0  }
   0x6 LB: > { %s3116_s22 = sadd.s32 4294967295, %s3038_s21   ;;  %s2265_s23 = sadd.s32 4294967294, %s3038_s21   ;;  %s3038_s21 = sphi %s3101_s21, %s3657_s21   ;;  %s3034_s20 = sphi %s3099_s20, %s3656_s20   ;;  %s3030_s19 = sphi %s3097_s19, %s3655_s19   ;;  %s3026_s18 = sphi %s3095_s18, %s3654_s18  }
   0x7   : > { %p42_p0 = scmp.ne.s32.totalorder %s3030_s19, %s3026_s18  ;;  %p3636_p1 = scmp.eq.s32.totalorder %s3116_s22, 0 }
   0x8   : > { %p156_p3 = scmp.eq.s32.totalorder %s2265_s23, 1  ;;  %p2266_p5 = scmp.ge.s32.totalorder %s3038_s21, 1 }
   0x9   : > { %p3125_p4 = por %p3636_p1, %p42_p0  ;;  %p163_p7 = scmp.lt.s32.totalorder %s3038_s21, 3 }
   0xa   : > { %p3130_p6 = por %p156_p3, %p42_p0  ;;  %s3040_s27 = smov [#allocation5]  }
   0xb   : > { %s3639_s24 = scalar_select %p3125_p4, 1, 0 }
   0xc   : > { %s3640_s25 = scalar_select %p3130_p6, 1, 0 }
   0xd   : > { %p3135_p8 = pnand %p2266_p5, %p163_p7  ;;  %s175_s28 = sshll.u32 %s3040_s27, 4  ;;  %s3139_s28 = int_to_ptr.vmem [resolvable:$true] %s175_s28 }
   0xe   : > { %s3041_s30 = smov [#allocation7]   ;;  %s2882_s9 = scalar_lea.hbm %s3631_s1, 2048 }
   0xf   : > { %p2667_p9 = pneg %p3135_p8  ;;  %s191_s6 = sshll.u32 %s3041_s30, 4  ;;  %s3150_s6 = int_to_ptr.vmem [resolvable:$true] %s191_s6 }
  0x10   : > { %p2883_p12 = scmp.ne.s32.totalorder %s3631_s1, %s2882_s9  ;;  %p2889_p5 = scmp.lt.u32.totalorder %s2882_s9, %s3631_s1 }
  0x11   : > { %p3146_p11 = pnand %p2667_p9, %p3636_p1 }
  0x13   : > { %p2884_p13 = pneg %p3146_p11 }
  0x15   : > { %p2885_p0 = pnand %p2884_p13, %p2883_p12 }
  0x17   : > { %p2886_p3 = pneg %p2885_p0 }
  0x19   : > { %p2891_p7 = pnand %p2889_p5, %p2886_p3 }
  0x1b   : > { %2894 = shalt.err (!%p2891_p7)
}
  0x1c   : > { %s2895_s14 = scalar_lea.vmem %s3139_s28, 2048  ;;  %p2903_p2 = scmp.lt.s32.totalorder %s3139_s28, %s3139_s28 }
  0x1d   : > { %p2896_p9 = scmp.ne.s32.totalorder %s3139_s28, %s2895_s14  ;;  %p2904_p12 = scmp.lt.s32.totalorder %s2895_s14, %s2895_s14 }
  0x1f   : > { %p2898_p10 = pnand %p2896_p9, %p2884_p13  ;;  %p2905_p0 = por %p2904_p12, %p2903_p2 }
  0x21   : > { %p2899_p1 = pneg %p2898_p10 }
  0x23   : > { %p2906_p6 = pnand %p2905_p0, %p2899_p1 }
  0x25   : > { %2909 = shalt.err (!%p2906_p6)
}
  0x26   : > { %s3042_s15 = smov 256   ;;  %s3043_s16 = smov 16  }
  0x27   : > { %2670 = dma.hbm_to_vmem [thread:$0]  (!%p3146_p11), %s3631_s1, 2048, %s3139_s28, [#allocation6], %s3042_s15, %s3042_s15, %s3043_s16  }
  0x28   : > { %s2910_s7 = scalar_lea.hbm %s3633_s3, 1024 }
  0x29   : > { %p2911_p2 = scmp.ne.s32.totalorder %s3633_s3, %s2910_s7  ;;  %p2917_p10 = scmp.lt.u32.totalorder %s2910_s7, %s3633_s3 }
  0x2b   : > { %p2913_p1 = pnand %p2911_p2, %p2884_p13 }
  0x2d   : > { %p2914_p6 = pneg %p2913_p1 }
  0x2f   : > { %p2919_p3 = pnand %p2917_p10, %p2914_p6 }
  0x31   : > { %2922 = shalt.err (!%p2919_p3)
}
  0x32   : > { %s2923_s28 = scalar_lea.vmem %s3150_s6, 1024  ;;  %p2931_p12 = scmp.lt.s32.totalorder %s3150_s6, %s3150_s6 }
  0x33   : > { %p2924_p5 = scmp.ne.s32.totalorder %s3150_s6, %s2923_s28  ;;  %p2932_p0 = scmp.lt.s32.totalorder %s2923_s28, %s2923_s28 }
  0x35   : > { %p2926_p7 = pnand %p2924_p5, %p2884_p13  ;;  %p2933_p2 = por %p2932_p0, %p2931_p12 }
  0x37   : > { %p2927_p9 = pneg %p2926_p7 }
  0x39   : > { %p2934_p1 = pnand %p2933_p2, %p2927_p9 }
  0x3b   : > { %2937 = shalt.err (!%p2934_p1)
}
  0x3c   : > { %s3044_s12 = smov 128   ;;  %s3045_s13 = smov 8  }
  0x3d   : > { %2673 = dma.hbm_to_vmem [thread:$0]  (!%p3146_p11), %s3633_s3, 1024, %s3150_s6, [#allocation6], %s3044_s12, %s3044_s12, %s3045_s13  }
  0x3e   : > { %s3208_s16 = sadd.s32 1, %s3038_s21   ;;  %s29_s23 = sadd.s32 1, %s3034_s20 }
  0x3f   : > { %s26_s17 = ssub.s32 %s3038_s21, %s3208_s16  ;;  %p36_p6 = scmp.ne.s32.totalorder %s3034_s20, %s3030_s19 }
  0x40   : > { %p27_p13 = scmp.eq.s32.totalorder %s26_s17, 0  ;;  %p37_p10 = scmp.eq.s32.totalorder %s3038_s21, 0 }
  0x41   : > { %p3643_p5 = scmp.eq.s32.totalorder %s3116_s22, 1  ;;  %p2684_p9 = scmp.lt.s32.totalorder %s3038_s21, 2 }
  0x42   : > { %s3217_s27 = scalar_select %p27_p13, %s3034_s20, %s29_s23  }
  0x43   : > { %p38_p3 = por %p37_p10, %p36_p6  ;;  %p3221_p7 = por %p3643_p5, %p36_p6 }
  0x44   : > { %s208_s30 = sand.u32 1, %s3034_s20   ;;  %s2336_s6 = sshll.u32 %s3038_s21, 8 }
  0x45   : > { %s3644_s29 = scalar_select %p3221_p7, 1, 0 }
  0x46   : > { %s2270_s7 = sshll.u32 %s208_s30, 4  ;;  %s3231_s10 = scalar_lea.hbm %s3630_s0, %s2336_s6 }
  0x47   : > { %s212_s11 = scalar_lea.vmem [#allocation2], %s2270_s7  ;;  %p3235_p11 = pnand %p2684_p9, %p38_p3 }
  0x48   : > { %s219_s28 = sshll.u32 %s212_s11, 4  ;;  %s3239_s15 = scalar_lea.sflag [#allocation3], %s208_s30  ;;  %s3233_s28 = int_to_ptr.vmem [resolvable:$true] %s219_s28 }
  0x49   : > { %s2938_s17 = scalar_lea.hbm %s3231_s10, 256  ;;  %p2940_p0 = pneg %p3235_p11 }
  0x4a   : > { %p2939_p12 = scmp.ne.s32.totalorder %s3231_s10, %s2938_s17  ;;  %s2943_s6 = scalar_lea.hbm %s3630_s0, 512 }
  0x4b   : > { %p2944_p13 = scmp.lt.u32.totalorder %s3231_s10, %s3630_s0  ;;  %p2945_p6 = scmp.lt.u32.totalorder %s2943_s6, %s2938_s17 }
  0x4c   : > { %p2941_p2 = pnand %p2940_p0, %p2939_p12  ;;  %p2947_p3 = scmp.lt.u32.totalorder %s2938_s17, %s3231_s10 }
  0x4d   : > { %p2946_p10 = por %p2945_p6, %p2944_p13 }
  0x4e   : > { %p2942_p1 = pneg %p2941_p2 }
  0x4f   : > { %p2948_p5 = por %p2947_p3, %p2946_p10 }
  0x51   : > { %p2949_p9 = pnand %p2948_p5, %p2942_p1 }
  0x53   : > { %2952 = shalt.err (!%p2949_p9)
}
  0x54   : > { %s2953_s30 = scalar_lea.vmem %s3233_s28, 256  ;;  %s3046_s11 = smov [#allocation2]  }
  0x55   : > { %p2954_p12 = scmp.ne.s32.totalorder %s3233_s28, %s2953_s30  ;;  %s2958_s23 = sshll.u32 %s3046_s11, 4  ;;  %s2959_s23 = int_to_ptr.vmem [resolvable:$false] %s2958_s23 }
  0x56   : > { %s2960_s7 = scalar_lea.vmem %s2959_s23, 512  ;;  %p2961_p4 = scmp.lt.s32.totalorder %s3233_s28, %s2959_s23 }
  0x57   : > { %p2956_p2 = pnand %p2954_p12, %p2940_p0  ;;  %p2962_p13 = scmp.lt.s32.totalorder %s2960_s7, %s2953_s30 }
  0x59   : > { %p2957_p7 = pneg %p2956_p2  ;;  %p2963_p6 = por %p2962_p13, %p2961_p4 }
  0x5b   : > { %p2964_p10 = pnand %p2963_p6, %p2957_p7 }
  0x5d   : > { %2967 = shalt.err (!%p2964_p10)
}
  0x5e   : > { %2677 = dma.hbm_to_vmem [thread:$0]  (!%p3235_p11), %s3231_s10, 256, %s3233_s28, %s3239_s15, %s3044_s12, %s3044_s12, %s3045_s13  }
  0x5f   : > { %231 = sbr.rel (%p3135_p8) target bundleno = 3701 (0xe75), region = 40  ;;  %s3273_s17 = sand.u32 (!%p3135_p8), 1, %s3030_s19  }
  0x60   : > { %s2274_s6 = sshll.u32 (!%p3135_p8), %s3273_s17, 4  ;;  %s234_s8 = scalar_lea.sflag (!%p3135_p8), [#allocation3], %s3273_s17 }
  0x61   : > { %s3279_s14 = scalar_lea.vmem (!%p3135_p8), [#allocation2], %s2274_s6  ;;  %p3646_p4 = scmp.ne.s32.totalorder (!%p3135_p8), %s3639_s24, 0 }
  0x66   : > { %3013 = dma.done.wait (%p3646_p4), %s234_s8, 256  }
  0x67   : > { %3015 = vsyncadd (%p3646_p4), %s234_s8, 4294967040  ;;  %p3647_p7 = scmp.eq.s32.totalorder %s3116_s22, 0 }
  0x69   : > { %3017 = dma.done.wait (%p3647_p7), [#allocation6], 3072   ;;  %p3648_p8 = pmov %p3647_p7 }
  0x6a   : > { %v3047_v0 = vmov 0.0   ;;  %v275_v1 = vld [vmem:[#allocation5 + $0x8] sm:$0xff]  ;;  %v277_v2 = vld [vmem:[#allocation5 + $0x18] sm:$0xff]  ;;  %v274_v3 = vld [vmem:[#allocation5] sm:$0xff]  ;;  %vm302_vm0 = vcmask 523264   ;;  %v292_v27 = vlaneseq  ;;  %vm394_vm1 = vcmask 64512  }
  0x6b   : > { %3019 = vsyncadd (%p3648_p8), [#allocation6], 4294964224  ;;  %373 = vmatprep.mubr.f32.mxu0 %v3047_v0  ;;  %v2543_v4 = vpack.c.bf16 %v277_v2, %v275_v1  ;;  %v276_v5 = vld [vmem:[#allocation5 + $0x10] sm:$0xff]  ;;  %v279_v6 = vld [vmem:[#allocation5 + $0x28] sm:$0xff]  ;;  %s3048_s12 = smov 64   ;;  %vm480_vm3 = vcmask 130048  }
  0x6c   : > { %v281_v7 = vld [vmem:[#allocation5 + $0x38] sm:$0xff]  ;;  %v2545_v8 = vpack.c.bf16 %v276_v5, %v274_v3  ;;  %v278_v10 = vld [vmem:[#allocation5 + $0x20] sm:$0xff]  ;;  %v280_v11 = vld [vmem:[#allocation5 + $0x30] sm:$0xff]  ;;  %v293_v28 = vshrl.u32 %v292_v27, 7  ;;  %s3049_s13 = smov 56   ;;  %s3050_s10 = smov 120  }
  0x6d   : > { %v2547_v9 = vpack.c.bf16 %v281_v7, %v279_v6  ;;  %v283_v12 = vld [vmem:[#allocation5 + $0x48] sm:$0xff]  ;;  %2544 = vmatprep.subr.bf16.mxu0 %v2543_v4  ;;  %v285_v13 = vld [vmem:[#allocation5 + $0x58] sm:$0xff]  ;;  %v2549_v14 = vpack.c.bf16 %v280_v11, %v278_v10  ;;  %v282_v16 = vld [vmem:[#allocation5 + $0x40] sm:$0xff]  ;;  %s3051_s28 = smov 112   ;;  %s3052_s15 = smov 48   ;;  %vm2046_vm4 = vcmask 195584  }
  0x6e   : > { %2546 = vmatpush1.bf16.msra.mxu0 %v2545_v8  ;;  %v2551_v15 = vpack.c.bf16 %v285_v13, %v283_v12  ;;  %v284_v17 = vld [vmem:[#allocation5 + $0x50] sm:$0xff]  ;;  %v287_v18 = vld [vmem:[#allocation5 + $0x68] sm:$0xff]  ;;  %v289_v19 = vld [vmem:[#allocation5 + $0x78] sm:$0xff]  ;;  %v294_v29 = vsub.s32 0, %v293_v28  ;;  %v298_v32 = vsub.s32 1, %v293_v28  ;;  %s3053_s9 = smov 40  }
  0x6f   : > { %2548 = vmatprep.subr.bf16.mxu0 %v2547_v9  ;;  %v2553_v20 = vpack.c.bf16 %v284_v17, %v282_v16  ;;  %v2555_v21 = vpack.c.bf16 %v289_v19, %v287_v18  ;;  %v286_v22 = vld [vmem:[#allocation5 + $0x60] sm:$0xff]  ;;  %v288_v23 = vld [vmem:[#allocation5 + $0x70] sm:$0xff]  ;;  %v273_v26 = vld [vmem:[%s3279_s14 + $0x8] sm:$0xff]  ;;  %s3054_s30 = smov 104   ;;  %s3055_s11 = smov 32   ;;  %vm2049_vm5 = vcmask 261120  }
  0x70   : > { %v2557_v24 = vpack.c.bf16 %v288_v23, %v286_v22  ;;  %v272_v25 = vld [vmem:[%s3279_s14] sm:$0xff]  ;;  %vm3307_vm2 = vmpackc.low %vm394_vm1, %vm394_vm1  ;;  %s3056_s23 = smov 96   ;;  %s3057_s7 = smov 24   ;;  %vm2052_vm6 = vcmask 326656   ;;  %vm2055_vm7 = vcmask 392192   ;;  %vm2058_vm8 = vcmask 457728  }
  0x71   : > { %v290_v30 = vld [vmem:[%s3632_s2] sm:$0x3]  ;;  %s3058_s8 = smov 88   ;;  %s3059_s14 = smov 16  }
  0x72   : > { %2550 = vmatpush1.bf16.msra.mxu0 %v2549_v14  ;;  %v295_v31 = vrot.slane %v290_v30, %v294_v29  ;;  %v299_v36 = vrot.slane %v290_v30, %v298_v32  ;;  %s3060_s24 = smov 80   ;;  %s3061_s26 = smov 8  }
  0x73   : > { %2552 = vmatprep.subr.bf16.mxu0 %v2551_v15  ;;  %p3651_p0 = scmp.ne.s32.totalorder %s3644_s29, 0 }
  0x76   : > { %2554 = vmatpush1.bf16.msra.mxu0 %v2553_v20 }
  0x77   : > { %2556 = vmatprep.subr.bf16.mxu0 %v2555_v21 }
  0x7a   : > { %2558 = vmatpush1.bf16.msra.mxu0 %v2557_v24 }
  0x7d   : > { %2278 = vmatmul.mubr.msk.f32.vlgmr.msra.gmra.mrb[0].mxu0 %vm302_vm0, %v272_v25 }
  0x7e   : > { %379 = vmatprep.mubr.f32.mxu0 %v3047_v0 }
  0x81   : > { %2279 = vmatmul.mubr.msk.f32.gmra.mrb[2].mxu0 %vm302_vm0, %v273_v26 }
 0x150   : > { %v375_v33 = vpop.f32.mrb[0].mxu0 }
 0x151   : > { %v376_v34 = vadd.f32 %v375_v33, %v295_v31  ;;  %v377_v35 = vpop.f32.mrb[1].mxu0 }
 0x152   : > { %v378_v41 = vadd.f32 %v377_v35, %v299_v36 }
 0x153   : > { %v3296_v37 = vmul.f32 0.35355338, %v376_v34 }
 0x154   : > { %v381_v38 = vpop.f32.mrb[2].mxu0 }
 0x155   : > { %v382_v39 = vadd.f32 %v381_v38, %v295_v31  ;;  %v383_v40 = vpop.f32.mrb[3].mxu0  ;;  %2416 = vmatprep.mubr.msk.f32.mxu0 %vm394_vm1, %v3296_v37 }
 0x156   : > { %v384_v42 = vadd.f32 %v383_v40, %v299_v36 }
 0x157   : > { %v3300_v43 = vpack.i.bf16 %v382_v39, %v376_v34  ;;  %v3315_v51 = vmul.f32 0.35355338, %v382_v39 }
 0x158   : > { %v2565_v44 = vpack.c.bf16 %v384_v42, %v378_v41  ;;  %v3302_v45 = vpack.i.bf16 %v384_v42, %v378_v41 }
 0x159   : > { %2744 = vrot.lane.b32.xlu0 %v3300_v43, %s3048_s12  ;;  %s3062_s12 = smov 72  }
 0x15a   : > { %2566 = vmatprep.subr.bf16.mxu1 %v2565_v44 }
 0x15b   : > { %2568 = vmatpush3.bf16.msra.mxu1 %v2565_v44 }
 0x1cb   : > { %v2745_v46 = vpop.permute.xlu0 %2744 }
 0x1cc   : > { %v2747_v47 = vunpack.i.h.bf16 %v2745_v46  ;;  %v2746_v48 = vunpack.i.l.bf16 %v2745_v46 }
 0x1ce   : > { %v2559_v50 = vpack.c.bf16 %v2747_v47, %v2746_v48 }
 0x1d0   : > { %2561 = vmatprep.subr.msk.bf16.mxu0 %vm3307_vm2, %v2559_v50 }
 0x1d1   : > { %2564 = vmatpush3.bf16.xpose.msk.msra.mxu0 %vm3307_vm2, %v2559_v50 }
 0x1d8   : > { %2417 = vmatmul.mubr.msk.f32.vlgmr.msra.gmra.mrb[4].mxu0 %vm394_vm1, %v3315_v51 }
 0x2ab   : > { %v2418_v52 = vpop.f32.mrb[4].mxu0 }
 0x2ac   : > { %v471_v53 = vpop.f32.mrb[5].mxu0  ;;  %v484_v54 = vsel %vm480_vm3, %v2418_v52, -inf }
 0x2ad   : > { %485 = vmax.xlane.f32.xlu1 %v484_v54  ;;  %v481_v55 = vsel %vm480_vm3, %v471_v53, -inf }
 0x2ae   : > { %482 = vmax.xlane.f32.xlu0 %v481_v55 }
 0x2be   : > { %2749 = vrot.lane.b32.xlu1 %v3300_v43, %s3049_s13 }
 0x2c2   : > { %584 = vrot.lane.b32.xlu1 %v3296_v37, %s3050_s10 }
 0x2c4   : > { %788 = vrot.lane.b32.xlu0 %v3315_v51, %s3051_s28 }
 0x2c6   : > { %2754 = vrot.lane.b32.xlu1 %v3300_v43, %s3052_s15 }
 0x2ca   : > { %586 = vrot.lane.b32.xlu1 %v3315_v51, %s3050_s10 }
 0x2ce   : > { %786 = vrot.lane.b32.xlu1 %v3296_v37, %s3051_s28 }
 0x2d2   : > { %2759 = vrot.lane.b32.xlu1 %v3302_v45, %s3050_s10 }
 0x2d6   : > { %2769 = vrot.lane.b32.xlu1 %v3300_v43, %s3053_s9 }
 0x33a   : > { %v486_v56 = vpop.xlane.xlu1 %485 }
 0x33b   : > { %v488_v57 = vsub.f32 %v2418_v52, %v486_v56  ;;  %v483_v58 = vpop.xlane.xlu0 %482 }
 0x33c   : > { %v487_v59 = vsub.f32 %v471_v53, %v483_v58 }
 0x33d   : > { %v491_v60 = vmul.f32 1.442695, %v488_v57 }
 0x33e   : > { %v489_v61 = vmul.f32 1.442695, %v487_v59  ;;  %v2750_v62 = vpop.permute.xlu1 %2749 }
 0x33f   : > { %v2752_v63 = vunpack.i.h.bf16 %v2750_v62  ;;  %v2751_v0 = vunpack.i.l.bf16 %v2750_v62  ;;  %v789_v15 = vpop.permute.xlu0 %788 }
 0x340   : > { %2818 = vpow2.f32 %v489_v61 }
 0x341   : > { %2820 = vpow2.f32 %v491_v60  ;;  %v2569_v1 = vpack.c.bf16 %v2752_v63, %v2751_v0 }
 0x342   : > { %v585_v2 = vpop.permute.xlu1 %584 }
 0x343   : > { %2571 = vmatprep.subr.msk.bf16.mxu1 %vm3307_vm2, %v2569_v1 }
 0x346   : > { %v2755_v3 = vpop.permute.xlu1 %2754 }
 0x347   : > { %v2757_v4 = vunpack.i.h.bf16 %v2755_v3  ;;  %v2756_v5 = vunpack.i.l.bf16 %v2755_v3 }
 0x349   : > { %v2579_v9 = vpack.c.bf16 %v2757_v4, %v2756_v5 }
 0x34a   : > { %v3336_v6 = vpop.eup %2818  ;;  %v587_v7 = vpop.permute.xlu1 %586 }
 0x34b   : > { %v3338_v8 = vpop.eup %2820  ;;  %2423 = vmatprep.mubr.msk.f32.mxu1 %vm480_vm3, %v3336_v6 }
 0x34c   : > { %2424 = vmatmul.mubr.msk.f32.vlgmr.msra.gmra.mrb[0].mxu1 %vm480_vm3, %v3338_v8 }
 0x34d   : > { %2574 = vmatpush3.bf16.xpose.msk.msra.mxu1 %vm3307_vm2, %v2569_v1  ;;  %2430 = vmatprep.mubr.msk.f32.mxu1 %vm394_vm1, %v585_v2 }
 0x34e   : > { %2581 = vmatprep.subr.msk.bf16.mxu1 %vm3307_vm2, %v2579_v9  ;;  %v787_v10 = vpop.permute.xlu1 %786 }
 0x352   : > { %v2760_v11 = vpop.permute.xlu1 %2759 }
 0x353   : > { %v2762_v12 = vunpack.i.h.bf16 %v2760_v11  ;;  %v2761_v13 = vunpack.i.l.bf16 %v2760_v11 }
 0x354   : > { %2431 = vmatmul.mubr.msk.f32.vlgmr.msra.gmra.mrb[2].mxu1 %vm394_vm1, %v587_v7 }
 0x355   : > { %v2575_v14 = vpack.c.bf16 %v2762_v12, %v2761_v13  ;;  %2584 = vmatpush3.bf16.xpose.msk.msra.mxu1 %vm3307_vm2, %v2579_v9  ;;  %2444 = vmatprep.mubr.msk.f32.mxu1 %vm394_vm1, %v787_v10 }
 0x356   : > { %v2770_v26 = vpop.permute.xlu1 %2769 }
 0x357   : > { %2576 = vmatprep.subr.bf16.mxu0 %v2575_v14  ;;  %v2772_v42 = vunpack.i.h.bf16 %v2770_v26  ;;  %v2771_v44 = vunpack.i.l.bf16 %v2770_v26 }
 0x358   : > { %2578 = vmatpush3.bf16.msra.mxu0 %v2575_v14 }
 0x359   : > { %v2589_v52 = vpack.c.bf16 %v2772_v42, %v2771_v44 }
 0x35c   : > { %2445 = vmatmul.mubr.msk.f32.vlgmr.msra.gmra.mrb[4].mxu1 %vm394_vm1, %v789_v15 }
 0x41f   : > { %v3354_v16 = vpop.f32.mrb[0].mxu1 }
 0x420   : > { %v3356_v17 = vpop.f32.mrb[1].mxu1 }
 0x427   : > { %v2432_v18 = vpop.f32.mrb[2].mxu1 }
 0x428   : > { %v666_v19 = vpop.f32.mrb[3].mxu1  ;;  %v678_v20 = vsel %vm480_vm3, %v2432_v18, -inf }
 0x429   : > { %679 = vmax.xlane.f32.xlu0 %v678_v20  ;;  %v675_v21 = vsel %vm480_vm3, %v666_v19, -inf }
 0x42a   : > { %676 = vmax.xlane.f32.xlu1 %v675_v21 }
 0x42f   : > { %v2446_v22 = vpop.f32.mrb[4].mxu1 }
 0x430   : > { %v868_v23 = vpop.f32.mrb[5].mxu1  ;;  %v880_v24 = vsel %vm480_vm3, %v2446_v22, -inf }
 0x431   : > { %881 = vmax.xlane.f32.xlu1 %v880_v24  ;;  %v877_v25 = vsel %vm480_vm3, %v868_v23, -inf }
 0x435   : > { %878 = vmax.xlane.f32.xlu1 %v877_v25 }
 0x43f   : > { %2764 = vrot.lane.b32.xlu0 %v3302_v45, %s3051_s28  ;;  %s271_s28 = scalar_lea.vmem [#allocation8], %s2274_s6  ;;  %s2160_s6 = scalar_lea.sflag [#allocation4], %s3273_s17 }
 0x446   : > { %986 = vrot.lane.b32.xlu1 %v3296_v37, %s3054_s30 }
 0x44a   : > { %988 = vrot.lane.b32.xlu1 %v3315_v51, %s3054_s30 }
 0x4b6   : > { %v680_v27 = vpop.xlane.xlu0 %679 }
 0x4b7   : > { %v682_v28 = vsub.f32 %v2432_v18, %v680_v27  ;;  %v677_v29 = vpop.xlane.xlu1 %676 }
 0x4b8   : > { %v681_v30 = vsub.f32 %v666_v19, %v677_v29 }
 0x4b9   : > { %v685_v31 = vmul.f32 1.442695, %v682_v28 }
 0x4ba   : > { %v683_v32 = vmul.f32 1.442695, %v681_v30  ;;  %v2765_v33 = vpop.permute.xlu0 %2764 }
 0x4bb   : > { %v2767_v34 = vunpack.i.h.bf16 %v2765_v33  ;;  %v2766_v35 = vunpack.i.l.bf16 %v2765_v33 }
 0x4bc   : > { %2822 = vpow2.f32 %v683_v32 }
 0x4bd   : > { %2824 = vpow2.f32 %v685_v31  ;;  %v2585_v36 = vpack.c.bf16 %v2767_v34, %v2766_v35 }
 0x4be   : > { %v882_v38 = vpop.xlane.xlu1 %881 }
 0x4bf   : > { %2586 = vmatprep.subr.bf16.mxu0 %v2585_v36  ;;  %v884_v39 = vsub.f32 %v2446_v22, %v882_v38 }
 0x4c1   : > { %v887_v46 = vmul.f32 1.442695, %v884_v39 }
 0x4c2   : > { %v879_v40 = vpop.xlane.xlu1 %878 }
 0x4c3   : > { %v883_v41 = vsub.f32 %v868_v23, %v879_v40 }
 0x4c5   : > { %v885_v47 = vmul.f32 1.442695, %v883_v41 }
 0x4c6   : > { %v3368_v48 = vpop.eup %2822  ;;  %v987_v55 = vpop.permute.xlu1 %986 }
 0x4c7   : > { %v3370_v50 = vpop.eup %2824  ;;  %2826 = vpow2.f32 %v885_v47  ;;  %2437 = vmatprep.mubr.msk.f32.mxu0 %vm480_vm3, %v3368_v48 }
 0x4c8   : > { %2828 = vpow2.f32 %v887_v46  ;;  %2438 = vmatmul.mubr.msk.f32.vlgmr.msra.gmra.mrb[6].mxu0 %vm480_vm3, %v3370_v50  ;;  %v690_v49 = vsel %vm480_vm3, %v3370_v50, 0.0 }
 0x4c9   : > { %2588 = vmatpush3.bf16.msra.mxu0 %v2585_v36 }
 0x4ca   : > { %2591 = vmatprep.subr.msk.bf16.mxu0 %vm3307_vm2, %v2589_v52  ;;  %v989_v56 = vpop.permute.xlu1 %988 }
 0x4d1   : > { %v3378_v53 = vpop.eup %2826 }
 0x4d2   : > { %v3380_v54 = vpop.eup %2828  ;;  %2451 = vmatprep.mubr.msk.f32.mxu0 %vm480_vm3, %v3378_v53 }
 0x4d3   : > { %2452 = vmatmul.mubr.msk.f32.vlgmr.msra.gmra.mrb[8].mxu0 %vm480_vm3, %v3380_v54 }
 0x4d4   : > { %2594 = vmatpush3.bf16.xpose.msk.msra.mxu0 %vm3307_vm2, %v2589_v52  ;;  %2458 = vmatprep.mubr.msk.f32.mxu0 %vm394_vm1, %v987_v55 }
 0x4db   : > { %2459 = vmatmul.mubr.msk.f32.vlgmr.msra.gmra.mrb[10].mxu0 %vm394_vm1, %v989_v56 }
 0x59b   : > { %v3390_v57 = vpop.f32.mrb[6].mxu0 }
 0x59c   : > { %v3392_v58 = vpop.f32.mrb[7].mxu0 }
 0x5a6   : > { %v3394_v59 = vpop.f32.mrb[8].mxu0 }
 0x5a7   : > { %v3396_v60 = vpop.f32.mrb[9].mxu0 }
 0x5ae   : > { %v2460_v61 = vpop.f32.mrb[10].mxu0 }
 0x5af   : > { %v1068_v62 = vpop.f32.mrb[11].mxu0  ;;  %v1080_v63 = vsel %vm480_vm3, %v2460_v61, -inf }
 0x5b0   : > { %1081 = vmax.xlane.f32.xlu1 %v1080_v63  ;;  %v1077_v0 = vsel %vm480_vm3, %v1068_v62, -inf }
 0x5b1   : > { %1078 = vmax.xlane.f32.xlu0 %v1077_v0 }
 0x5c1   : > { %2779 = vrot.lane.b32.xlu1 %v3300_v43, %s3055_s11 }
 0x5c5   : > { %1188 = vrot.lane.b32.xlu1 %v3315_v51, %s3056_s23 }
 0x5c7   : > { %2774 = vrot.lane.b32.xlu0 %v3302_v45, %s3054_s30 }
 0x5cb   : > { %1186 = vrot.lane.b32.xlu0 %v3296_v37, %s3056_s23 }
 0x63d   : > { %v1082_v1 = vpop.xlane.xlu1 %1081 }
 0x63e   : > { %v1084_v2 = vsub.f32 %v2460_v61, %v1082_v1  ;;  %v1079_v3 = vpop.xlane.xlu0 %1078 }
 0x63f   : > { %v1083_v4 = vsub.f32 %v1068_v62, %v1079_v3 }
 0x640   : > { %v1087_v5 = vmul.f32 1.442695, %v1084_v2 }
 0x641   : > { %v1085_v7 = vmul.f32 1.442695, %v1083_v4  ;;  %v2780_v9 = vpop.permute.xlu1 %2779 }
 0x642   : > { %v2782_v10 = vunpack.i.h.bf16 %v2780_v9  ;;  %v2775_v11 = vpop.permute.xlu0 %2774  ;;  %v2781_v12 = vunpack.i.l.bf16 %v2780_v9 }
 0x643   : > { %2830 = vpow2.f32 %v1085_v7  ;;  %v2777_v13 = vunpack.i.h.bf16 %v2775_v11  ;;  %v2776_v14 = vunpack.i.l.bf16 %v2775_v11 }
 0x644   : > { %2832 = vpow2.f32 %v1087_v5  ;;  %v2599_v18 = vpack.c.bf16 %v2782_v10, %v2781_v12 }
 0x645   : > { %v2595_v15 = vpack.c.bf16 %v2777_v13, %v2776_v14  ;;  %v1189_v22 = vpop.permute.xlu1 %1188 }
 0x646   : > { %v1187_v21 = vpop.permute.xlu0 %1186 }
 0x647   : > { %2596 = vmatprep.subr.bf16.mxu1 %v2595_v15 }
 0x648   : > { %2598 = vmatpush3.bf16.msra.mxu1 %v2595_v15 }
 0x649   : > { %2601 = vmatprep.subr.msk.bf16.mxu1 %vm3307_vm2, %v2599_v18 }
 0x64d   : > { %v3410_v19 = vpop.eup %2830 }
 0x64e   : > { %v3412_v20 = vpop.eup %2832  ;;  %2465 = vmatprep.mubr.msk.f32.mxu1 %vm480_vm3, %v3410_v19 }
 0x64f   : > { %2466 = vmatmul.mubr.msk.f32.vlgmr.msra.gmra.mrb[6].mxu1 %vm480_vm3, %v3412_v20 }
 0x650   : > { %2472 = vmatprep.mubr.msk.f32.mxu1 %vm394_vm1, %v1187_v21 }
 0x651   : > { %2604 = vmatpush3.bf16.xpose.msk.msra.mxu1 %vm3307_vm2, %v2599_v18 }
 0x658   : > { %2473 = vmatmul.mubr.msk.f32.vlgmr.msra.gmra.mrb[8].mxu1 %vm394_vm1, %v1189_v22 }
 0x722   : > { %v3422_v23 = vpop.f32.mrb[6].mxu1 }
 0x723   : > { %v3424_v24 = vpop.f32.mrb[7].mxu1 }
 0x72b   : > { %v2474_v25 = vpop.f32.mrb[8].mxu1 }
 0x72c   : > { %v1268_v26 = vpop.f32.mrb[9].mxu1  ;;  %v1280_v27 = vsel %vm480_vm3, %v2474_v25, -inf }
 0x72d   : > { %1281 = vmax.xlane.f32.xlu1 %v1280_v27  ;;  %v1277_v28 = vsel %vm480_vm3, %v1268_v26, -inf }
 0x72e   : > { %1278 = vmax.xlane.f32.xlu0 %v1277_v28 }
 0x73e   : > { %2789 = vrot.lane.b32.xlu1 %v3300_v43, %s3057_s7 }
 0x742   : > { %1388 = vrot.lane.b32.xlu1 %v3315_v51, %s3058_s8 }
 0x744   : > { %2784 = vrot.lane.b32.xlu0 %v3302_v45, %s3056_s23 }
 0x748   : > { %1386 = vrot.lane.b32.xlu0 %v3296_v37, %s3058_s8 }
 0x7ba   : > { %v1282_v29 = vpop.xlane.xlu1 %1281 }
 0x7bb   : > { %v1284_v30 = vsub.f32 %v2474_v25, %v1282_v29  ;;  %v1279_v31 = vpop.xlane.xlu0 %1278 }
 0x7bc   : > { %v1283_v32 = vsub.f32 %v1268_v26, %v1279_v31 }
 0x7bd   : > { %v1287_v33 = vmul.f32 1.442695, %v1284_v30 }
 0x7be   : > { %v1285_v34 = vmul.f32 1.442695, %v1283_v32  ;;  %v2790_v35 = vpop.permute.xlu1 %2789 }
 0x7bf   : > { %v2792_v36 = vunpack.i.h.bf16 %v2790_v35  ;;  %v2785_v38 = vpop.permute.xlu0 %2784  ;;  %v2791_v39 = vunpack.i.l.bf16 %v2790_v35 }
 0x7c0   : > { %2834 = vpow2.f32 %v1285_v34  ;;  %v2787_v40 = vunpack.i.h.bf16 %v2785_v38  ;;  %v2786_v41 = vunpack.i.l.bf16 %v2785_v38 }
 0x7c1   : > { %2836 = vpow2.f32 %v1287_v33  ;;  %v2609_v44 = vpack.c.bf16 %v2792_v36, %v2791_v39 }
 0x7c2   : > { %v2605_v42 = vpack.c.bf16 %v2787_v40, %v2786_v41  ;;  %v1389_v55 = vpop.permute.xlu1 %1388 }
 0x7c3   : > { %v1387_v52 = vpop.permute.xlu0 %1386 }
 0x7c4   : > { %2606 = vmatprep.subr.bf16.mxu0 %v2605_v42 }
 0x7c5   : > { %2608 = vmatpush3.bf16.msra.mxu0 %v2605_v42 }
 0x7c6   : > { %2611 = vmatprep.subr.msk.bf16.mxu0 %vm3307_vm2, %v2609_v44 }
 0x7ca   : > { %v3438_v46 = vpop.eup %2834 }
 0x7cb   : > { %v3440_v47 = vpop.eup %2836  ;;  %2479 = vmatprep.mubr.msk.f32.mxu0 %vm480_vm3, %v3438_v46 }
 0x7cc   : > { %2480 = vmatmul.mubr.msk.f32.vlgmr.msra.gmra.mrb[12].mxu0 %vm480_vm3, %v3440_v47  ;;  %v1292_v50 = vsel %vm480_vm3, %v3440_v47, 0.0 }
 0x7cd   : > { %2486 = vmatprep.mubr.msk.f32.mxu0 %vm394_vm1, %v1387_v52 }
 0x7ce   : > { %2614 = vmatpush3.bf16.xpose.msk.msra.mxu0 %vm3307_vm2, %v2609_v44 }
 0x7d5   : > { %2487 = vmatmul.mubr.msk.f32.vlgmr.msra.gmra.mrb[14].mxu0 %vm394_vm1, %v1389_v55 }
 0x89f   : > { %v3450_v56 = vpop.f32.mrb[12].mxu0 }
 0x8a0   : > { %v3452_v61 = vpop.f32.mrb[13].mxu0 }
 0x8a8   : > { %v2488_v62 = vpop.f32.mrb[14].mxu0 }
 0x8a9   : > { %v1468_v63 = vpop.f32.mrb[15].mxu0  ;;  %v1480_v0 = vsel %vm480_vm3, %v2488_v62, -inf }
 0x8aa   : > { %1481 = vmax.xlane.f32.xlu1 %v1480_v0  ;;  %v1477_v1 = vsel %vm480_vm3, %v1468_v63, -inf }
 0x8ab   : > { %1478 = vmax.xlane.f32.xlu0 %v1477_v1 }
 0x8bb   : > { %2799 = vrot.lane.b32.xlu1 %v3300_v43, %s3059_s14 }
 0x8bf   : > { %1588 = vrot.lane.b32.xlu1 %v3315_v51, %s3060_s24 }
 0x8c1   : > { %2794 = vrot.lane.b32.xlu0 %v3302_v45, %s3058_s8 }
 0x8c5   : > { %1586 = vrot.lane.b32.xlu0 %v3296_v37, %s3060_s24 }
 0x937   : > { %v1482_v2 = vpop.xlane.xlu1 %1481 }
 0x938   : > { %v1484_v3 = vsub.f32 %v2488_v62, %v1482_v2  ;;  %v1479_v4 = vpop.xlane.xlu0 %1478 }
 0x939   : > { %v1483_v5 = vsub.f32 %v1468_v63, %v1479_v4 }
 0x93a   : > { %v1487_v7 = vmul.f32 1.442695, %v1484_v3 }
 0x93b   : > { %v1485_v9 = vmul.f32 1.442695, %v1483_v5  ;;  %v2800_v10 = vpop.permute.xlu1 %2799 }
 0x93c   : > { %v2802_v11 = vunpack.i.h.bf16 %v2800_v10  ;;  %v2795_v12 = vpop.permute.xlu0 %2794  ;;  %v2801_v13 = vunpack.i.l.bf16 %v2800_v10  ;;  %v687_v10 = vsel %vm480_vm3, %v3368_v48, 0.0  ;;  %v1289_v48 = vsel %vm480_vm3, %v3438_v46, 0.0 }
 0x93d   : > { %2838 = vpow2.f32 %v1485_v9  ;;  %v2797_v14 = vunpack.i.h.bf16 %v2795_v12  ;;  %v2796_v15 = vunpack.i.l.bf16 %v2795_v12  ;;  %v892_v12 = vsel %vm480_vm3, %v3380_v54, 0.0 }
 0x93e   : > { %2840 = vpow2.f32 %v1487_v7  ;;  %v2619_v21 = vpack.c.bf16 %v2802_v11, %v2801_v13  ;;  %v889_v11 = vsel %vm480_vm3, %v3378_v53, 0.0  ;;  %v1089_v13 = vsel %vm480_vm3, %v3410_v19, 0.0 }
 0x93f   : > { %v2615_v18 = vpack.c.bf16 %v2797_v14, %v2796_v15  ;;  %v1589_v27 = vpop.permute.xlu1 %1588  ;;  %v1092_v46 = vsel %vm480_vm3, %v3412_v20, 0.0 }
 0x940   : > { %v1587_v26 = vpop.permute.xlu0 %1586 }
 0x941   : > { %2616 = vmatprep.subr.bf16.mxu1 %v2615_v18 }
 0x942   : > { %2618 = vmatpush3.bf16.msra.mxu1 %v2615_v18 }
 0x943   : > { %2621 = vmatprep.subr.msk.bf16.mxu1 %vm3307_vm2, %v2619_v21 }
 0x947   : > { %v3466_v22 = vpop.eup %2838 }
 0x948   : > { %v3468_v25 = vpop.eup %2840  ;;  %2493 = vmatprep.mubr.msk.f32.mxu1 %vm480_vm3, %v3466_v22  ;;  %v1489_v53 = vsel %vm480_vm3, %v3466_v22, 0.0 }
 0x949   : > { %2494 = vmatmul.mubr.msk.f32.vlgmr.msra.gmra.mrb[10].mxu1 %vm480_vm3, %v3468_v25  ;;  %v1492_v54 = vsel %vm480_vm3, %v3468_v25, 0.0 }
 0x94a   : > { %2500 = vmatprep.mubr.msk.f32.mxu1 %vm394_vm1, %v1587_v26 }
 0x94b   : > { %2624 = vmatpush3.bf16.xpose.msk.msra.mxu1 %vm3307_vm2, %v2619_v21 }
 0x952   : > { %2501 = vmatmul.mubr.msk.f32.vlgmr.msra.gmra.mrb[12].mxu1 %vm394_vm1, %v1589_v27 }
 0xa1c   : > { %v3478_v28 = vpop.f32.mrb[10].mxu1 }
 0xa1d   : > { %v3480_v29 = vpop.f32.mrb[11].mxu1 }
 0xa25   : > { %v2502_v30 = vpop.f32.mrb[12].mxu1 }
 0xa26   : > { %v1668_v31 = vpop.f32.mrb[13].mxu1  ;;  %v1680_v32 = vsel %vm480_vm3, %v2502_v30, -inf }
 0xa27   : > { %1681 = vmax.xlane.f32.xlu1 %v1680_v32  ;;  %v1677_v33 = vsel %vm480_vm3, %v1668_v31, -inf }
 0xa28   : > { %1678 = vmax.xlane.f32.xlu0 %v1677_v33 }
 0xa38   : > { %2809 = vrot.lane.b32.xlu1 %v3300_v43, %s3061_s26 }
 0xa3c   : > { %1788 = vrot.lane.b32.xlu1 %v3315_v51, %s3062_s12 }
 0xa3e   : > { %2804 = vrot.lane.b32.xlu0 %v3302_v45, %s3060_s24 }
 0xa42   : > { %1786 = vrot.lane.b32.xlu0 %v3296_v37, %s3062_s12 }
 0xab4   : > { %v1682_v34 = vpop.xlane.xlu1 %1681 }
 0xab5   : > { %v1684_v35 = vsub.f32 %v2502_v30, %v1682_v34  ;;  %v1679_v36 = vpop.xlane.xlu0 %1678 }
 0xab6   : > { %v1683_v38 = vsub.f32 %v1668_v31, %v1679_v36 }
 0xab7   : > { %v1687_v39 = vmul.f32 1.442695, %v1684_v35 }
 0xab8   : > { %v1685_v40 = vmul.f32 1.442695, %v1683_v38  ;;  %v2810_v41 = vpop.permute.xlu1 %2809 }
 0xab9   : > { %v2812_v42 = vunpack.i.h.bf16 %v2810_v41  ;;  %v2805_v44 = vpop.permute.xlu0 %2804  ;;  %v2811_v43 = vunpack.i.l.bf16 %v2810_v41  ;;  %v493_v41 = vsel %vm480_vm3, %v3336_v6, 0.0 }
 0xaba   : > { %2842 = vpow2.f32 %v1685_v40  ;;  %v2807_v52 = vunpack.i.h.bf16 %v2805_v44  ;;  %v2806_v55 = vunpack.i.l.bf16 %v2805_v44  ;;  %v496_v40 = vsel %vm480_vm3, %v3338_v8, 0.0 }
 0xabb   : > { %2844 = vpow2.f32 %v1687_v39  ;;  %v2629_v62 = vpack.c.bf16 %v2812_v42, %v2811_v43 }
 0xabc   : > { %v2625_v51 = vpack.c.bf16 %v2807_v52, %v2806_v55  ;;  %v1789_v1 = vpop.permute.xlu1 %1788 }
 0xabd   : > { %v1787_v0 = vpop.permute.xlu0 %1786 }
 0xabe   : > { %2626 = vmatprep.subr.bf16.mxu0 %v2625_v51 }
 0xabf   : > { %2628 = vmatpush3.bf16.msra.mxu0 %v2625_v51 }
 0xac0   : > { %2631 = vmatprep.subr.msk.bf16.mxu0 %vm3307_vm2, %v2629_v62 }
 0xac4   : > { %v2843_v37 = vpop.eup %2842 }
 0xac5   : > { %v2845_v63 = vpop.eup %2844  ;;  %2507 = vmatprep.mubr.msk.f32.mxu0 %vm480_vm3, %v2843_v37  ;;  %v1689_v19 = vsel %vm480_vm3, %v2843_v37, 0.0 }
 0xac6   : > { %2508 = vmatmul.mubr.msk.f32.vlgmr.msra.gmra.mrb[16].mxu0 %vm480_vm3, %v2845_v63 }
 0xac7   : > { %2514 = vmatprep.mubr.msk.f32.mxu0 %vm394_vm1, %v1787_v0 }
 0xac8   : > { %2634 = vmatpush3.bf16.xpose.msk.msra.mxu0 %vm3307_vm2, %v2629_v62 }
 0xacf   : > { %2515 = vmatmul.mubr.msk.f32.vlgmr.msra.gmra.mrb[18].mxu0 %vm394_vm1, %v1789_v1 }
 0xb99   : > { %v3500_v2 = vpop.f32.mrb[16].mxu0 }
 0xb9a   : > { %v3502_v3 = vpop.f32.mrb[17].mxu0 }
 0xba2   : > { %v2516_v4 = vpop.f32.mrb[18].mxu0 }
 0xba3   : > { %v1868_v5 = vpop.f32.mrb[19].mxu0  ;;  %v1880_v7 = vsel %vm480_vm3, %v2516_v4, -inf }
 0xba4   : > { %1881 = vmax.xlane.f32.xlu1 %v1880_v7  ;;  %v1877_v9 = vsel %vm480_vm3, %v1868_v5, -inf }
 0xba5   : > { %1878 = vmax.xlane.f32.xlu0 %v1877_v9 }
 0xba8   : > { %688 = vadd.xlane.f32.xlu1 %v687_v10 }
 0xbac   : > { %691 = vadd.xlane.f32.xlu1 %v690_v49 }
 0xbb0   : > { %890 = vadd.xlane.f32.xlu1 %v889_v11 }
 0xbb4   : > { %893 = vadd.xlane.f32.xlu1 %v892_v12 }
 0xbb8   : > { %1090 = vadd.xlane.f32.xlu1 %v1089_v13 }
 0xbbb   : > { %2814 = vrot.lane.b32.xlu0 %v3302_v45, %s3062_s12  ;;  %v1692_v45 = vsel %vm480_vm3, %v2845_v63, 0.0 }
 0xbbc   : > { %1290 = vadd.xlane.f32.xlu1 %v1289_v48 }
 0xbc0   : > { %1293 = vadd.xlane.f32.xlu1 %v1292_v50  ;;  %v2061_v50 = vld [vmem:[#allocation7] sm:$0xff] }
 0xbc4   : > { %1490 = vadd.xlane.f32.xlu1 %v1489_v53  ;;  %v2062_v53 = vld [vmem:[#allocation7 + $0x8] sm:$0xff] }
 0xbc8   : > { %1493 = vadd.xlane.f32.xlu1 %v1492_v54  ;;  %v2639_v54 = vpack.c.bf16 %v2062_v53, %v2061_v50 }
 0xbcc   : > { %1690 = vadd.xlane.f32.xlu1 %v1689_v19  ;;  %v2064_v19 = vld [vmem:[#allocation7 + $0x18] sm:$0xff] }
 0xbd0   : > { %1693 = vadd.xlane.f32.xlu1 %v1692_v45 }
 0xbda   : > { %1093 = vadd.xlane.f32.xlu0 %v1092_v46  ;;  %v2065_v46 = vld [vmem:[#allocation7 + $0x20] sm:$0xff] }
 0xc31   : > { %v1882_v47 = vpop.xlane.xlu1 %1881 }
 0xc32   : > { %v1884_v14 = vsub.f32 %v2516_v4, %v1882_v47  ;;  %v1879_v15 = vpop.xlane.xlu0 %1878 }
 0xc33   : > { %v1883_v18 = vsub.f32 %v1868_v5, %v1879_v15 }
 0xc34   : > { %v1887_v21 = vmul.f32 1.442695, %v1884_v14  ;;  %v2068_v14 = vld [vmem:[#allocation7 + $0x38] sm:$0xff] }
 0xc35   : > { %v1885_v22 = vmul.f32 1.442695, %v1883_v18  ;;  %v689_v26 = vpop.xlane.xlu1 %688 }
 0xc36   : > { %2846 = vpow2.f32 %v1887_v21  ;;  %v2815_v25 = vpop.permute.xlu0 %2814 }
 0xc37   : > { %2848 = vpow2.f32 %v1885_v22  ;;  %v2817_v27 = vunpack.i.h.bf16 %v2815_v25  ;;  %v2816_v30 = vunpack.i.l.bf16 %v2815_v25 }
 0xc38   : > { %2850 = vrcp.f32 %v689_v26 }
 0xc39   : > { %v2635_v31 = vpack.c.bf16 %v2817_v27, %v2816_v30  ;;  %v692_v32 = vpop.xlane.xlu1 %691 }
 0xc3a   : > { %2852 = vrcp.f32 %v692_v32 }
 0xc3b   : > { %2636 = vmatprep.subr.bf16.mxu1 %v2635_v31 }
 0xc3c   : > { %2638 = vmatpush3.bf16.msra.mxu1 %v2635_v31 }
 0xc3d   : > { %v891_v33 = vpop.xlane.xlu1 %890  ;;  %2640 = vmatprep.subr.bf16.mxu1 %v2639_v54 }
 0xc3e   : > { %2854 = vrcp.f32 %v891_v33 }
 0xc40   : > { %v2847_v34 = vpop.eup %2846 }
 0xc41   : > { %v2849_v20 = vpop.eup %2848  ;;  %v894_v35 = vpop.xlane.xlu1 %893  ;;  %v1892_v36 = vsel %vm480_vm3, %v2847_v34, 0.0 }
 0xc42   : > { %1893 = vadd.xlane.f32.xlu0 %v1892_v36  ;;  %2521 = vmatprep.mubr.msk.f32.mxu1 %vm480_vm3, %v2849_v20  ;;  %v1889_v38 = vsel %vm480_vm3, %v2849_v20, 0.0  ;;  %2856 = vrcp.f32 %v894_v35  ;;  %v2851_v52 = vpop.eup %2850 }
 0xc43   : > { %1890 = vadd.xlane.f32.xlu1 %v1889_v38  ;;  %2522 = vmatmul.mubr.msk.f32.vlgmr.msra.gmra.mrb[14].mxu1 %vm480_vm3, %v2847_v34  ;;  %v784_v51 = vmul.f32 %v2851_v52, %v3392_v58 }
 0xc44   : > { %v2853_v55 = vpop.eup %2852  ;;  %2642 = vmatpush3.bf16.msra.mxu1 %v2639_v54 }
 0xc45   : > { %v1091_v39 = vpop.xlane.xlu1 %1090  ;;  %v785_v6 = vmul.f32 %v2853_v55, %v3390_v57 }
 0xc46   : > { %497 = vadd.xlane.f32.xlu0 %v496_v40  ;;  %2858 = vrcp.f32 %v1091_v39 }
 0xc47   : > { %494 = vadd.xlane.f32.xlu1 %v493_v41 }
 0xc48   : > { %v2855_v62 = vpop.eup %2854 }
 0xc49   : > { %v1291_v42 = vpop.xlane.xlu1 %1290  ;;  %v984_v8 = vmul.f32 %v2855_v62, %v3396_v60 }
 0xc4a   : > { %2860 = vrcp.f32 %v1291_v42 }
 0xc4c   : > { %v2857_v63 = vpop.eup %2856 }
 0xc4d   : > { %v1294_v44 = vpop.xlane.xlu1 %1293  ;;  %v985_v1 = vmul.f32 %v2857_v63, %v3394_v59 }
 0xc50   : > { %v2859_v4 = vpop.eup %2858 }
 0xc51   : > { %v1491_v43 = vpop.xlane.xlu1 %1490  ;;  %v1184_v58 = vmul.f32 %v2859_v4, %v3424_v24 }
 0xc52   : > { %2862 = vrcp.f32 %v1491_v43 }
 0xc54   : > { %v2861_v5 = vpop.eup %2860 }
 0xc55   : > { %v1494_v37 = vpop.xlane.xlu1 %1493  ;;  %v1384_v57 = vmul.f32 %v2861_v5, %v3452_v61 }
 0xc58   : > { %1988 = vrot.lane.b32.xlu1 %v784_v51, %s3061_s26 }
 0xc59   : > { %v1691_v0 = vpop.xlane.xlu1 %1690 }
 0xc5a   : > { %2864 = vrcp.f32 %v1691_v0 }
 0xc5c   : > { %1990 = vrot.lane.b32.xlu0 %v785_v6, %s3061_s26  ;;  %1996 = vrot.lane.b32.xlu1 %v984_v8, %s3059_s14  ;;  %v2863_v60 = vpop.eup %2862 }
 0xc5d   : > { %v1584_v9 = vmul.f32 %v2863_v60, %v3480_v29  ;;  %v1694_v24 = vpop.xlane.xlu1 %1693 }
 0xc60   : > { %1998 = vrot.lane.b32.xlu1 %v985_v1, %s3059_s14 }
 0xc64   : > { %2004 = vrot.lane.b32.xlu1 %v1184_v58, %s3057_s7  ;;  %v2865_v59 = vpop.eup %2864 }
 0xc65   : > { %v1784_v10 = vmul.f32 %v2865_v59, %v3502_v3 }
 0xc67   : > { %v1094_v7 = vpop.xlane.xlu0 %1093 }
 0xc68   : > { %2866 = vrcp.f32 %v1094_v7  ;;  %2012 = vrot.lane.b32.xlu1 %v1384_v57, %s3055_s11 }
 0xc69   : > { %2868 = vrcp.f32 %v1294_v44 }
 0xc6a   : > { %2870 = vrcp.f32 %v1494_v37 }
 0xc6b   : > { %2872 = vrcp.f32 %v1694_v24 }
 0xc6c   : > { %2020 = vrot.lane.b32.xlu1 %v1584_v9, %s3053_s9 }
 0xc70   : > { %2028 = vrot.lane.b32.xlu1 %v1784_v10, %s3052_s15  ;;  %v2328_v10 = vld [vmem:[%s3634_s4] ss:$0 sm:$0xff] }
 0xc72   : > { %v2867_v49 = vpop.eup %2866 }
 0xc73   : > { %v1185_v61 = vmul.f32 %v2867_v49, %v3422_v23  ;;  %v2869_v11 = vpop.eup %2868  ;;  %v2063_v23 = vld [vmem:[#allocation7 + $0x10] sm:$0xff] }
 0xc74   : > { %v1385_v12 = vmul.f32 %v2869_v11, %v3450_v56  ;;  %v2871_v13 = vpop.eup %2870  ;;  %v2643_v45 = vpack.c.bf16 %v2064_v19, %v2063_v23  ;;  %v2066_v56 = vld [vmem:[#allocation7 + $0x28] sm:$0xff] }
 0xc75   : > { %2006 = vrot.lane.b32.xlu0 %v1185_v61, %s3057_s7  ;;  %v1585_v29 = vmul.f32 %v2871_v13, %v3478_v28  ;;  %v2873_v48 = vpop.eup %2872  ;;  %v2647_v47 = vpack.c.bf16 %v2066_v56, %v2065_v46  ;;  %v2067_v28 = vld [vmem:[#allocation7 + $0x30] sm:$0xff]  ;;  %s3063_s7 = smov [#allocation8]  }
 0xc76   : > { %v1785_v3 = vmul.f32 %v2873_v48, %v3500_v2  ;;  %2644 = vmatprep.subr.bf16.mxu1 %v2643_v45  ;;  %v2651_v15 = vpack.c.bf16 %v2068_v14, %v2067_v28  ;;  %s2972_s8 = sshll.u32 %s3063_s7, 4  ;;  %s2973_s8 = int_to_ptr.vmem [resolvable:$false] %s2972_s8 }
 0xc77   : > { %2646 = vmatpush3.bf16.msra.mxu1 %v2643_v45  ;;  %s2974_s14 = scalar_lea.vmem %s2973_s8, 512 }
 0xc78   : > { %2648 = vmatprep.subr.bf16.mxu1 %v2647_v47 }
 0xc79   : > { %2014 = vrot.lane.b32.xlu0 %v1385_v12, %s3055_s11 }
 0xc7b   : > { %2650 = vmatpush3.bf16.msra.mxu1 %v2647_v47 }
 0xc7c   : > { %2652 = vmatprep.subr.bf16.mxu1 %v2651_v15 }
 0xc7d   : > { %2022 = vrot.lane.b32.xlu0 %v1585_v29, %s3053_s9  ;;  %s2337_s9 = sshll.u32 %s3116_s22, 8 }
 0xc7e   : > { %s3583_s23 = scalar_lea.hbm %s3635_s5, %s2337_s9 }
 0xc7f   : > { %2654 = vmatpush3.bf16.msra.mxu1 %v2651_v15 }
 0xc81   : > { %2030 = vrot.lane.b32.xlu0 %v1785_v3, %s3052_s15  ;;  %s2173_s15 = sshll.u32 %s271_s28, 4  ;;  %s3578_s15 = int_to_ptr.vmem [resolvable:$true] %s2173_s15 }
 0xc82   : > { %s2968_s22 = scalar_lea.vmem %s3578_s15, 256  ;;  %p2975_p5 = scmp.lt.s32.totalorder %s3578_s15, %s2973_s8 }
 0xc83   : > { %p2969_p11 = scmp.ne.s32.totalorder %s3578_s15, %s2968_s22  ;;  %p2976_p9 = scmp.lt.s32.totalorder %s2974_s14, %s2968_s22 }
 0xc85   : > { %p2970_p1 = pnand %p2969_p11, %p3651_p0  ;;  %p2977_p12 = por %p2976_p9, %p2975_p5 }
 0xc87   : > { %p2971_p3 = pneg %p2970_p1 }
 0xc89   : > { %p2978_p2 = pnand %p2977_p12, %p2971_p3 }
 0xccf   : > { %v1894_v2 = vpop.xlane.xlu0 %1893 }
 0xcd0   : > { %v1891_v18 = vpop.xlane.xlu1 %1890  ;;  %2874 = vrcp.f32 %v1894_v2 }
 0xcd1   : > { %2876 = vrcp.f32 %v1891_v18 }
 0xcd3   : > { %v498_v34 = vpop.xlane.xlu0 %497 }
 0xcd4   : > { %v495_v31 = vpop.xlane.xlu1 %494 }
 0xcd5   : > { %2878 = vrcp.f32 %v495_v31 }
 0xcd6   : > { %2880 = vrcp.f32 %v498_v34 }
 0xcd7   : > { %v1991_v35 = vpop.permute.xlu0 %1990 }
 0xcd8   : > { %v1989_v32 = vpop.permute.xlu1 %1988 }
 0xcda   : > { %v2875_v21 = vpop.eup %2874 }
 0xcdb   : > { %v2877_v26 = vpop.eup %2876 }
 0xcdc   : > { %v1997_v33 = vpop.permute.xlu1 %1996 }
 0xcdf   : > { %v2879_v40 = vpop.eup %2878 }
 0xce0   : > { %v1999_v20 = vpop.permute.xlu1 %1998  ;;  %v2881_v42 = vpop.eup %2880  ;;  %v582_v44 = vmul.f32 %v2879_v40, %v3356_v17 }
 0xce1   : > { %v583_v52 = vmul.f32 %v2881_v42, %v3354_v16 }
 0xce2   : > { %v2042_v51 = vsel %vm394_vm1, %v582_v44, %v1989_v32 }
 0xce3   : > { %v2043_v62 = vsel %vm394_vm1, %v583_v52, %v1991_v35  ;;  %v2044_v37 = vsel %vm480_vm3, %v2042_v51, %v1997_v33 }
 0xce4   : > { %v2005_v38 = vpop.permute.xlu1 %2004  ;;  %v2045_v63 = vsel %vm480_vm3, %v2043_v62, %v1999_v20 }
 0xce5   : > { %v2047_v0 = vsel %vm2046_vm4, %v2044_v37, %v2005_v38 }
 0xce7   : > { %v2007_v36 = vpop.permute.xlu0 %2006 }
 0xce8   : > { %v2013_v41 = vpop.permute.xlu1 %2012  ;;  %v2048_v17 = vsel %vm2046_vm4, %v2045_v63, %v2007_v36 }
 0xce9   : > { %v2050_v1 = vsel %vm2049_vm5, %v2047_v0, %v2013_v41 }
 0xceb   : > { %v2015_v39 = vpop.permute.xlu0 %2014 }
 0xcec   : > { %v2021_v55 = vpop.permute.xlu1 %2020  ;;  %v2051_v16 = vsel %vm2049_vm5, %v2048_v17, %v2015_v39 }
 0xced   : > { %v2053_v4 = vsel %vm2052_vm6, %v2050_v1, %v2021_v55 }
 0xcef   : > { %v2023_v43 = vpop.permute.xlu0 %2022 }
 0xcf0   : > { %v2029_v8 = vpop.permute.xlu1 %2028  ;;  %v2054_v5 = vsel %vm2052_vm6, %v2051_v16, %v2023_v43 }
 0xcf1   : > { %v2056_v57 = vsel %vm2055_vm7, %v2053_v4, %v2029_v8 }
 0xcf3   : > { %v2031_v6 = vpop.permute.xlu0 %2030 }
 0xcf4   : > { %v2057_v7 = vsel %vm2055_vm7, %v2054_v5, %v2031_v6 }
 0xd16   : > { %v2523_v22 = vpop.f32.mrb[14].mxu1 }
 0xd17   : > { %v1985_v25 = vmul.f32 %v2875_v21, %v2523_v22  ;;  %v1973_v27 = vpop.f32.mrb[15].mxu1 }
 0xd18   : > { %v1984_v30 = vmul.f32 %v2877_v26, %v1973_v27 }
 0xd19   : > { %2038 = vrot.lane.b32.xlu0 %v1985_v25, %s3049_s13 }
 0xd1a   : > { %2036 = vrot.lane.b32.xlu1 %v1984_v30, %s3049_s13 }
 0xd8b   : > { %v2039_v58 = vpop.permute.xlu0 %2038 }
 0xd8c   : > { %v2037_v60 = vpop.permute.xlu1 %2036  ;;  %v2060_v59 = vsel %vm2058_vm8, %v2057_v7, %v2039_v58 }
 0xd8d   : > { %v2059_v9 = vsel %vm2058_vm8, %v2056_v57, %v2037_v60 }
 0xd8e   : > { %2540 = vmatprep.mubr.msk.f32.mxu1 %vm302_vm0, %v2059_v9 }
 0xd8f   : > { %2541 = vmatmul.mubr.msk.f32.vlgmr.msra.gmra.mrb[16].mxu1 %vm302_vm0, %v2060_v59 }
 0xe62   : > { %v2542_v24 = vpop.f32.mrb[16].mxu1 }
 0xe63   : > { %v2154_v49 = vadd.f32 %v2542_v24, %v2328_v10  ;;  %v2148_v61 = vpop.f32.mrb[17].mxu1 }
 0xe64   : > { %v2149_v11 = vadd.f32 %v2328_v10, %v2148_v61 }
 0xe65   : > { %2158 = vst.msk [vmem:[%s271_s28 + $0x8] sm:$0xff] %vm302_vm0, %v2154_v49 }
 0xe66   : > { %2157 = vst.msk [vmem:[%s271_s28] sm:$0xff] %vm302_vm0, %v2149_v11 }
 0xe67   : > { %2981 = shalt.err (!%p2978_p2)
}
 0xe68   : > { %s2982_s24 = scalar_lea.hbm %s3583_s23, 256  ;;  %s2986_s10 = scalar_lea.hbm %s3635_s5, 512 }
 0xe69   : > { %p2983_p13 = scmp.ne.s32.totalorder %s3583_s23, %s2982_s24  ;;  %p2987_p4 = scmp.lt.u32.totalorder %s3583_s23, %s3635_s5 }
 0xe6a   : > { %p2988_p7 = scmp.lt.u32.totalorder %s2986_s10, %s2982_s24  ;;  %p2990_p11 = scmp.lt.u32.totalorder %s2982_s24, %s3583_s23 }
 0xe6b   : > { %p2984_p6 = pnand %p2983_p13, %p3651_p0 }
 0xe6c   : > { %p2989_p8 = por %p2988_p7, %p2987_p4 }
 0xe6d   : > { %p2985_p10 = pneg %p2984_p6 }
 0xe6e   : > { %p2991_p1 = por %p2990_p11, %p2989_p8 }
 0xe70   : > { %p2992_p3 = pnand %p2991_p1, %p2985_p10 }
 0xe72   : > { %2995 = shalt.err (!%p2992_p3)
}
 0xe73   : > { %s3064_s30 = smov 128  }
 0xe74   : > { %2665 = dma.vmem_to_hbm [thread:$0]  (%p3651_p0), %s3578_s15, 256, %s3583_s23, %s2160_s6, %s3064_s30, %s3064_s30, %s3061_s26  }
 0xe75 PF: > { %s2188_s11 = sand.u32 1, %s3026_s18   ;;  %p3652_p5 = scmp.ne.s32.totalorder %s3640_s25, 0 }
 0xe76   : > { %p3653_p9 = scmp.ge.s32.totalorder %s3038_s21, 2  ;;  %s2189_s22 = scalar_lea.sflag [#allocation4], %s2188_s11 }
 0xe78   : > { %p2679_p12 = pnand %p3653_p9, %p3652_p5 }
 0xe7a   : > { %3021 = dma.done.wait (!%p2679_p12), %s2189_s22, 256  }
 0xe7b   : > { %3023 = vsyncadd (!%p2679_p12), %s2189_s22, 4294967040  ;;  %p19_p2 = scmp.ge.s32.totalorder %s3208_s16, 4   ;;  %s3654_s18 = smov %s3030_s19 }
 0xe7c   : > { %s3655_s19 = smov %s3034_s20  ;;  %s3656_s20 = smov %s3217_s27 }
 0xe7d   : > { %s3657_s21 = smov %s3208_s16  ;;  %21 = sbr.rel (!%p19_p2) target bundleno = 6 (0x6), region = 93 }
 0xe84   :  { %2194 = vsyncpa [#allocation3], 1 }
 0xe85   :  { %2196 = vsyncpa [#allocation3 + $0x1], 1 }
 0xe86   :  { %2197 = vsyncpa [#allocation6], 1 }
 0xe87   :  { %2198 = vsyncpa [#allocation4], 1 }
 0xe88   :  { %2200 = vsyncpa [#allocation4 + $0x1], 1 }

</bundles_post_ra>
